<compile_context>
chip_gen: v5e
topology: v5e:2x2
jax: 0.10.0
libtpu: 0.0.40
codegen_flags: <defaults>
</compile_context>

<pallas_src>
import jax
import jax.numpy as jnp
from jax import lax
from jax.experimental import pallas as pl
from jax.experimental.pallas import tpu as pltpu

EPS = 1e-5


def _make_kernel(tq, tk, ns, ns_pad):
    mask_style = (ns_pad != ns)

    def kernel(c_ref, s_ref, cstat_ref, sstat_ref, w_ref, b_ref,
               out_ref,
               f_cache, g_cache, h_cache, m_sc, l_sc, acc_sc):
        qi = pl.program_id(1)
        ki = pl.program_id(2)
        nk = pl.num_programs(2)

        # ---- per-query-tile init: F projection + online-softmax state ------
        @pl.when(ki == 0)
        def _init_query_tile():
            c_f32 = c_ref[0].astype(jnp.float32)                    # (C, tq)
            cs = cstat_ref[0]                                       # (C, 2)
            cn = (c_f32 - cs[:, 0:1]) * cs[:, 1:2]
            f = lax.dot_general(w_ref[0], cn.astype(jnp.bfloat16),
                                (((1,), (0,)), ((), ())),
                                preferred_element_type=jnp.float32)
            f = f + b_ref[:, 0:1]
            f_cache[...] = f.astype(jnp.bfloat16)
            m_sc[...] = jnp.full(m_sc.shape, -jnp.inf, dtype=m_sc.dtype)
            l_sc[...] = jnp.zeros(l_sc.shape, dtype=l_sc.dtype)
            acc_sc[...] = jnp.zeros(acc_sc.shape, dtype=acc_sc.dtype)

        # ---- per-style-tile projections, cached across all query tiles -----
        @pl.when(qi == 0)
        def _project_style_tile():
            s_bf = s_ref[0]                                         # (C, tk) bf16
            s_f32 = s_bf.astype(jnp.float32)
            ss = sstat_ref[0]                                       # (C, 2)
            sn = (s_f32 - ss[:, 0:1]) * ss[:, 1:2]
            g = lax.dot_general(w_ref[1], sn.astype(jnp.bfloat16),
                                (((1,), (0,)), ((), ())),
                                preferred_element_type=jnp.float32)
            g = g + b_ref[:, 1:2]
            h = lax.dot_general(w_ref[2], s_bf,
                                (((1,), (0,)), ((), ())),
                                preferred_element_type=jnp.float32)
            h = h + b_ref[:, 2:3]
            g_cache[ki] = g.astype(jnp.bfloat16)
            h_cache[ki] = h.astype(jnp.bfloat16)

        # ---- online-softmax attention step ----------------------------------
        f_tile = f_cache[...]                                       # (C, tq) bf16
        g_tile = g_cache[ki]                                        # (C, tk) bf16
        h_tile = h_cache[ki]                                        # (C, tk) bf16

        # S = F^T G via direct contraction on the channel axis (no transpose).
        s_logits = lax.dot_general(f_tile, g_tile,
                                   (((0,), (0,)), ((), ())),
                                   preferred_element_type=jnp.float32)  # (tq, tk)
        if mask_style:
            col = ki * tk + lax.broadcasted_iota(jnp.int32, s_logits.shape, 1)
            s_logits = jnp.where(col < ns, s_logits, -jnp.inf)

        m_prev = m_sc[...]                                          # (tq, 1)
        m_new = jnp.maximum(m_prev, jnp.max(s_logits, axis=-1, keepdims=True))
        alpha = jnp.exp(m_prev - m_new)                             # (tq, 1)
        p = jnp.exp(s_logits - m_new)                               # (tq, tk) f32
        l_sc[...] = alpha * l_sc[...] + jnp.sum(p, axis=-1, keepdims=True)
        # acc holds O^T: contract style positions directly (no P.T transpose).
        acc_sc[...] = alpha * acc_sc[...] + lax.dot_general(
            p.astype(jnp.bfloat16), h_tile,
            (((1,), (1,)), ((), ())),
            preferred_element_type=jnp.float32)                     # (tq, C)
        m_sc[...] = m_new

        # ---- finalize: normalize, out_conv, residual -------------------------
        @pl.when(ki == nk - 1)
        def _finalize():
            inv_l = pl.reciprocal(l_sc[...], approx=True)           # (tq, 1)
            o_t = (acc_sc[...] * inv_l).astype(jnp.bfloat16)        # (tq, C)
            o = lax.dot_general(w_ref[3], o_t,
                                (((1,), (1,)), ((), ())),
                                preferred_element_type=jnp.float32)  # (C, tq)
            o = o + b_ref[:, 3:4] + c_ref[0].astype(jnp.float32)
            out_ref[0] = o.astype(out_ref.dtype)

    return kernel


def _mvn_stats(x):
    """(B, C, N) f32 -> (B, C, 2) with [mean, rsqrt(unbiased var + eps)]."""
    n = x.shape[-1]
    mean = jnp.mean(x, axis=-1, keepdims=True)
    var = jnp.sum((x - mean) ** 2, axis=-1, keepdims=True) / max(n - 1, 1)
    rstd = lax.rsqrt(var + EPS)
    return jnp.concatenate([mean, rstd], axis=-1)


def _pad_last(x, n_pad):
    n = x.shape[-1]
    if n == n_pad:
        return x
    return jnp.pad(x, ((0, 0), (0, 0), (0, n_pad - n)))


def sanet_forward(content, style, params, *, tq=128, tk=128):
    """content, style: (B, C, H, W) float32.  params: (C,C) weights / (C,) biases."""
    B, C, Hc, Wc = content.shape
    _, _, Hs, Ws = style.shape
    nc, ns = Hc * Wc, Hs * Ws
    assert tq % 128 == 0 and tk % 128 == 0, "tiles must be lane-aligned (x128)"

    c_flat = content.reshape(B, C, nc).astype(jnp.float32)
    s_flat = style.reshape(B, C, ns).astype(jnp.float32)

    # Instance-norm statistics (whole-image reduction) computed once in f32.
    cstats = _mvn_stats(c_flat)
    sstats = _mvn_stats(s_flat)

    n_q = pl.cdiv(nc, tq)
    n_k = pl.cdiv(ns, tk)
    nc_pad = n_q * tq
    ns_pad = n_k * tk

    # bf16 activations at the pallas_call boundary (halves DMA, feeds MXU).
    c_bf = _pad_last(c_flat.astype(jnp.bfloat16), nc_pad)
    s_bf = _pad_last(s_flat.astype(jnp.bfloat16), ns_pad)

    # Pack the four 1x1-conv weights / biases into single operands.
    w_pack = jnp.stack([params["wf"], params["wg"], params["wh"], params["wo"]],
                       axis=0).astype(jnp.bfloat16)                 # (4, C, C)
    b_pack = jnp.stack([params["bf"], params["bg"], params["bh"], params["bo"]],
                       axis=-1).astype(jnp.float32)                 # (C, 4)

    kernel = _make_kernel(tq, tk, ns, ns_pad)

    # Rough VMEM budget: pipelined tiles (double-buffered) + persistent scratch.
    est = (2 * C * tq * 2          # content tiles (bf16)
           + 2 * C * tk * 2        # style tiles (bf16)
           + 2 * C * tq * 4        # output tiles (f32)
           + 2 * 4 * C * C * 2     # packed weights (bf16)
           + 2 * C * 4 * 4         # packed biases
           + 4 * C * 2 * 4         # stats
           + C * tq * 2            # F cache
           + 2 * C * ns_pad * 2    # G/H caches
           + tq * C * 4            # output accumulator
           + 2 * tq * 128 * 4      # running max / sum (lane padded)
           + 4 * tq * tk * 4)      # logits / probs working-set headroom
    vmem_limit = int(min(max(2 * est, 32 * 2 ** 20), 64 * 2 ** 20))

    grid_spec = pltpu.PrefetchScalarGridSpec(
        num_scalar_prefetch=0,
        grid=(B, n_q, n_k),
        in_specs=[
            pl.BlockSpec((1, C, tq), lambda b, qi, ki: (b, 0, qi)),   # content
            pl.BlockSpec((1, C, tk), lambda b, qi, ki: (b, 0, ki)),   # style
            pl.BlockSpec((1, C, 2), lambda b, qi, ki: (b, 0, 0)),     # content stats
            pl.BlockSpec((1, C, 2), lambda b, qi, ki: (b, 0, 0)),     # style stats
            pl.BlockSpec((4, C, C), lambda b, qi, ki: (0, 0, 0)),     # packed weights
            pl.BlockSpec((C, 4), lambda b, qi, ki: (0, 0)),           # packed biases
        ],
        out_specs=pl.BlockSpec((1, C, tq), lambda b, qi, ki: (b, 0, qi)),
        scratch_shapes=[
            pltpu.VMEM((C, tq), jnp.bfloat16),        # F cache (per query tile)
            pltpu.VMEM((n_k, C, tk), jnp.bfloat16),   # G cache (per batch)
            pltpu.VMEM((n_k, C, tk), jnp.bfloat16),   # H cache (per batch)
            pltpu.VMEM((tq, 1), jnp.float32),         # running max
            pltpu.VMEM((tq, 1), jnp.float32),         # running sum
            pltpu.VMEM((tq, C), jnp.float32),         # output accumulator (O^T)
        ],
    )

    out = pl.pallas_call(
        kernel,
        out_shape=jax.ShapeDtypeStruct((B, C, nc_pad), jnp.float32),
        grid_spec=grid_spec,
        compiler_params=pltpu.CompilerParams(
            # Style axis = online-softmax reduction.  Query axis stays
            # sequential because the G/H projections are cached in scratch at
            # qi == 0 and reused for qi > 0; batch axis is parallel (megacore).
            dimension_semantics=("parallel", "arbitrary", "arbitrary"),
            vmem_limit_bytes=vmem_limit,
        ),
    )(c_bf, s_bf, cstats, sstats, w_pack, b_pack)

    return out[:, :, :nc].reshape(B, C, Hc, Wc)


def sanet_reference(content, style, params):
    """Pure-JAX f32 reference mirroring the PyTorch forward, for verification."""
    B, C, Hc, Wc = content.shape
    c_flat = content.reshape(B, C, -1)
    s_flat = style.reshape(B, C, -1)

    def mvn(x):
        n = x.shape[-1]
        mean = jnp.mean(x, axis=-1, keepdims=True)
        var = jnp.sum((x - mean) ** 2, axis=-1, keepdims=True) / (n - 1)
        return (x - mean) / jnp.sqrt(var + EPS)

    def conv(w, b, x):
        return jnp.einsum("oc,bcn->bon", w, x) + b[None, :, None]

    F = conv(params["wf"], params["bf"], mvn(c_flat))
    G = conv(params["wg"], params["bg"], mvn(s_flat))
    H = conv(params["wh"], params["bh"], s_flat)
    S = jnp.einsum("bcn,bcm->bnm", F, G)          # (B, Nc, Ns)
    S = jax.nn.softmax(S, axis=-1)
    O = jnp.einsum("bcm,bnm->bcn", H, S)          # (B, C, Nc)
    O = conv(params["wo"], params["bo"], O) + c_flat
    return O.reshape(B, C, Hc, Wc)


def init_params(key, C):
    """Deterministic init matching PyTorch Conv2d shapes (1x1 kernels)."""
    bound = 1.0 / jnp.sqrt(C)
    keys = jax.random.split(key, 8)
    names = ["wf", "bf", "wg", "bg", "wh", "bh", "wo", "bo"]
    params = {}
    for i, name in enumerate(names):
        shape = (C, C) if name.startswith("w") else (C,)
        params[name] = jax.random.uniform(
            keys[i], shape, jnp.float32, minval=-bound, maxval=bound)
    return params


if __name__ == "__main__":
    key = jax.random.PRNGKey(0)
    k_c, k_s, k_p = jax.random.split(key, 3)

    B, C, H, W = 2, 32, 16, 16
    content = jax.random.normal(k_c, (B, C, H, W), jnp.float32)
    style = jax.random.normal(k_s, (B, C, H, W), jnp.float32)
    params = init_params(k_p, C)

    out = jax.block_until_ready(sanet_forward(content, style, params))
    ref = sanet_reference(content, style, params)

    assert out.shape == (B, C, H, W)
    # bf16 matmul inputs -> compare with a norm-wise tolerance vs f32 reference.
    err = float(jnp.max(jnp.abs(out - ref)))
    scale = float(jnp.max(jnp.abs(ref))) + 1e-6
    assert err / scale < 2e-2, f"mismatch vs reference: max_err={err}, scale={scale}"

    print("KERNEL_OK")
</pallas_src>

<mosaic_0001>
module attributes {stable_mosaic.version = 11 : i64} {
  func.func @kernel(%arg0: i32, %arg1: i32, %arg2: i32, %arg3: memref<1x32x128xbf16, #tpu.memory_space<vmem>>, %arg4: memref<1x32x128xbf16, #tpu.memory_space<vmem>>, %arg5: memref<1x32x2xf32, #tpu.memory_space<vmem>>, %arg6: memref<1x32x2xf32, #tpu.memory_space<vmem>>, %arg7: memref<4x32x32xbf16, #tpu.memory_space<vmem>>, %arg8: memref<32x4xf32, #tpu.memory_space<vmem>>, %arg9: memref<1x32x128xf32, #tpu.memory_space<vmem>>, %arg10: memref<32x128xbf16, #tpu.memory_space<vmem>>, %arg11: memref<2x32x128xbf16, #tpu.memory_space<vmem>>, %arg12: memref<2x32x128xbf16, #tpu.memory_space<vmem>>, %arg13: memref<128x1xf32, #tpu.memory_space<vmem>>, %arg14: memref<128x1xf32, #tpu.memory_space<vmem>>, %arg15: memref<128x32xf32, #tpu.memory_space<vmem>>) attributes {dimension_semantics = [#tpu.dimension_semantics<parallel>, #tpu.dimension_semantics<arbitrary>, #tpu.dimension_semantics<arbitrary>], iteration_bounds = array<i64: 2, 2, 2>, scalar_prefetch = 0 : i64, scratch_operands = 6 : i64, tpu.core_type = #tpu.core_type<tc>, window_params = [{transform_indices = @transform_0, window_bounds = array<i64: 1, 32, 128>}, {transform_indices = @transform_1, window_bounds = array<i64: 1, 32, 128>}, {transform_indices = @transform_2, window_bounds = array<i64: 1, 32, 2>}, {transform_indices = @transform_3, window_bounds = array<i64: 1, 32, 2>}, {pipeline_mode = #tpu.pipeline_mode<synchronous>, transform_indices = @transform_4, window_bounds = array<i64: 4, 32, 32>}, {pipeline_mode = #tpu.pipeline_mode<synchronous>, transform_indices = @transform_5, window_bounds = array<i64: 32, 4>}, {transform_indices = @transform_6, window_bounds = array<i64: 1, 32, 128>}]} {
    %c0_i32 = arith.constant 0 : i32
    %0 = arith.cmpi eq, %arg2, %c0_i32 : i32
    %1 = arith.extui %0 : i1 to i32
    %c0_i32_0 = arith.constant 0 : i32
    %2 = arith.cmpi ne, %1, %c0_i32_0 : i32
    scf.if %2 {
      %c0_24 = arith.constant 0 : index
      %c0_25 = arith.constant 0 : index
      %c0_26 = arith.constant 0 : index
      %40 = vector.load %arg3[%c0_24, %c0_25, %c0_26] : memref<1x32x128xbf16, #tpu.memory_space<vmem>>, vector<1x32x128xbf16>
      %41 = vector.shape_cast %40 : vector<1x32x128xbf16> to vector<32x128xbf16>
      %42 = arith.extf %41 : vector<32x128xbf16> to vector<32x128xf32>
      %c0_27 = arith.constant 0 : index
      %c0_28 = arith.constant 0 : index
      %c0_29 = arith.constant 0 : index
      %43 = vector.load %arg5[%c0_27, %c0_28, %c0_29] : memref<1x32x2xf32, #tpu.memory_space<vmem>>, vector<1x32x2xf32>
      %44 = vector.shape_cast %43 : vector<1x32x2xf32> to vector<32x2xf32>
      %45 = vector.extract_strided_slice %44 {offsets = [0, 0], sizes = [32, 1], strides = [1, 1]} : vector<32x2xf32> to vector<32x1xf32>
      %46 = vector.broadcast %45 : vector<32x1xf32> to vector<32x128xf32>
      %47 = arith.subf %42, %46 : vector<32x128xf32>
      %48 = vector.extract_strided_slice %44 {offsets = [0, 1], sizes = [32, 1], strides = [1, 1]} : vector<32x2xf32> to vector<32x1xf32>
      %49 = vector.broadcast %48 : vector<32x1xf32> to vector<32x128xf32>
      %50 = arith.mulf %47, %49 : vector<32x128xf32>
      %c0_30 = arith.constant 0 : index
      %c0_31 = arith.constant 0 : index
      %c0_32 = arith.constant 0 : index
      %51 = vector.load %arg7[%c0_30, %c0_31, %c0_32] : memref<4x32x32xbf16, #tpu.memory_space<vmem>>, vector<1x32x32xbf16>
      %52 = vector.shape_cast %51 : vector<1x32x32xbf16> to vector<32x32xbf16>
      %53 = arith.truncf %50 : vector<32x128xf32> to vector<32x128xbf16>
      %cst_33 = arith.constant dense<0.000000e+00> : vector<32x128xf32>
      %54 = tpu.matmul %52, %53, %cst_33 {dimension_numbers = #tpu.dot_dimension_numbers<[1], [0], [0], [1], [0, 0, 1, 1], [], []>} : vector<32x32xbf16>, vector<32x128xbf16>, vector<32x128xf32> -> vector<32x128xf32>
      %c0_34 = arith.constant 0 : index
      %c0_35 = arith.constant 0 : index
      %55 = vector.load %arg8[%c0_34, %c0_35] : memref<32x4xf32, #tpu.memory_space<vmem>>, vector<32x1xf32>
      %56 = vector.broadcast %55 : vector<32x1xf32> to vector<32x128xf32>
      %57 = arith.addf %54, %56 : vector<32x128xf32>
      %58 = arith.truncf %57 : vector<32x128xf32> to vector<32x128xbf16>
      %c0_36 = arith.constant 0 : index
      %c0_37 = arith.constant 0 : index
      %59 = vector.load %arg10[%c0_36, %c0_37] : memref<32x128xbf16, #tpu.memory_space<vmem>>, vector<32x128xbf16>
      tpu.vector_store %arg10[%c0_36, %c0_37], %58 {strides = array<i32>} : memref<32x128xbf16, #tpu.memory_space<vmem>>, vector<32x128xbf16>,
      %cst_38 = arith.constant 0xFF800000 : f32
      %60 = vector.broadcast %cst_38 : f32 to vector<128x1xf32>
      %c0_39 = arith.constant 0 : index
      %c0_40 = arith.constant 0 : index
      %61 = vector.load %arg13[%c0_39, %c0_40] : memref<128x1xf32, #tpu.memory_space<vmem>>, vector<128x1xf32>
      tpu.vector_store %arg13[%c0_39, %c0_40], %60 {strides = array<i32>} : memref<128x1xf32, #tpu.memory_space<vmem>>, vector<128x1xf32>,
      %cst_41 = arith.constant 0.000000e+00 : f32
      %62 = vector.broadcast %cst_41 : f32 to vector<128x1xf32>
      %c0_42 = arith.constant 0 : index
      %c0_43 = arith.constant 0 : index
      %63 = vector.load %arg14[%c0_42, %c0_43] : memref<128x1xf32, #tpu.memory_space<vmem>>, vector<128x1xf32>
      tpu.vector_store %arg14[%c0_42, %c0_43], %62 {strides = array<i32>} : memref<128x1xf32, #tpu.memory_space<vmem>>, vector<128x1xf32>,
      %cst_44 = arith.constant 0.000000e+00 : f32
      %64 = vector.broadcast %cst_44 : f32 to vector<128x32xf32>
      %c0_45 = arith.constant 0 : index
      %c0_46 = arith.constant 0 : index
      %65 = vector.load %arg15[%c0_45, %c0_46] : memref<128x32xf32, #tpu.memory_space<vmem>>, vector<128x32xf32>
      tpu.vector_store %arg15[%c0_45, %c0_46], %64 {strides = array<i32>} : memref<128x32xf32, #tpu.memory_space<vmem>>, vector<128x32xf32>,
    } else {
    }
    %c0_i32_1 = arith.constant 0 : i32
    %3 = arith.cmpi eq, %arg1, %c0_i32_1 : i32
    %4 = arith.extui %3 : i1 to i32
    %c0_i32_2 = arith.constant 0 : i32
    %5 = arith.cmpi ne, %4, %c0_i32_2 : i32
    scf.if %5 {
      %c0_24 = arith.constant 0 : index
      %c0_25 = arith.constant 0 : index
      %c0_26 = arith.constant 0 : index
      %40 = vector.load %arg4[%c0_24, %c0_25, %c0_26] : memref<1x32x128xbf16, #tpu.memory_space<vmem>>, vector<1x32x128xbf16>
      %41 = vector.shape_cast %40 : vector<1x32x128xbf16> to vector<32x128xbf16>
      %42 = arith.extf %41 : vector<32x128xbf16> to vector<32x128xf32>
      %c0_27 = arith.constant 0 : index
      %c0_28 = arith.constant 0 : index
      %c0_29 = arith.constant 0 : index
      %43 = vector.load %arg6[%c0_27, %c0_28, %c0_29] : memref<1x32x2xf32, #tpu.memory_space<vmem>>, vector<1x32x2xf32>
      %44 = vector.shape_cast %43 : vector<1x32x2xf32> to vector<32x2xf32>
      %45 = vector.extract_strided_slice %44 {offsets = [0, 0], sizes = [32, 1], strides = [1, 1]} : vector<32x2xf32> to vector<32x1xf32>
      %46 = vector.broadcast %45 : vector<32x1xf32> to vector<32x128xf32>
      %47 = arith.subf %42, %46 : vector<32x128xf32>
      %48 = vector.extract_strided_slice %44 {offsets = [0, 1], sizes = [32, 1], strides = [1, 1]} : vector<32x2xf32> to vector<32x1xf32>
      %49 = vector.broadcast %48 : vector<32x1xf32> to vector<32x128xf32>
      %50 = arith.mulf %47, %49 : vector<32x128xf32>
      %c1 = arith.constant 1 : index
      %c0_30 = arith.constant 0 : index
      %c0_31 = arith.constant 0 : index
      %51 = vector.load %arg7[%c1, %c0_30, %c0_31] : memref<4x32x32xbf16, #tpu.memory_space<vmem>>, vector<1x32x32xbf16>
      %52 = vector.shape_cast %51 : vector<1x32x32xbf16> to vector<32x32xbf16>
      %53 = arith.truncf %50 : vector<32x128xf32> to vector<32x128xbf16>
      %cst_32 = arith.constant dense<0.000000e+00> : vector<32x128xf32>
      %54 = tpu.matmul %52, %53, %cst_32 {dimension_numbers = #tpu.dot_dimension_numbers<[1], [0], [0], [1], [0, 0, 1, 1], [], []>} : vector<32x32xbf16>, vector<32x128xbf16>, vector<32x128xf32> -> vector<32x128xf32>
      %c0_33 = arith.constant 0 : index
      %c1_34 = arith.constant 1 : index
      %55 = vector.load %arg8[%c0_33, %c1_34] : memref<32x4xf32, #tpu.memory_space<vmem>>, vector<32x1xf32>
      %56 = vector.broadcast %55 : vector<32x1xf32> to vector<32x128xf32>
      %57 = arith.addf %54, %56 : vector<32x128xf32>
      %c2 = arith.constant 2 : index
      %c0_35 = arith.constant 0 : index
      %c0_36 = arith.constant 0 : index
      %58 = vector.load %arg7[%c2, %c0_35, %c0_36] : memref<4x32x32xbf16, #tpu.memory_space<vmem>>, vector<1x32x32xbf16>
      %59 = vector.shape_cast %58 : vector<1x32x32xbf16> to vector<32x32xbf16>
      %cst_37 = arith.constant dense<0.000000e+00> : vector<32x128xf32>
      %60 = tpu.matmul %59, %41, %cst_37 {dimension_numbers = #tpu.dot_dimension_numbers<[1], [0], [0], [1], [0, 0, 1, 1], [], []>} : vector<32x32xbf16>, vector<32x128xbf16>, vector<32x128xf32> -> vector<32x128xf32>
      %c0_38 = arith.constant 0 : index
      %c2_39 = arith.constant 2 : index
      %61 = vector.load %arg8[%c0_38, %c2_39] : memref<32x4xf32, #tpu.memory_space<vmem>>, vector<32x1xf32>
      %62 = vector.broadcast %61 : vector<32x1xf32> to vector<32x128xf32>
      %63 = arith.addf %60, %62 : vector<32x128xf32>
      %64 = arith.truncf %57 : vector<32x128xf32> to vector<32x128xbf16>
      %65 = arith.index_cast %arg2 : i32 to index
      %c0_40 = arith.constant 0 : index
      %c0_41 = arith.constant 0 : index
      %66 = vector.load %arg11[%65, %c0_40, %c0_41] : memref<2x32x128xbf16, #tpu.memory_space<vmem>>, vector<1x32x128xbf16>
      %67 = vector.shape_cast %66 : vector<1x32x128xbf16> to vector<32x128xbf16>
      %68 = vector.shape_cast %64 : vector<32x128xbf16> to vector<1x32x128xbf16>
      tpu.vector_store %arg11[%65, %c0_40, %c0_41], %68 {strides = array<i32>} : memref<2x32x128xbf16, #tpu.memory_space<vmem>>, vector<1x32x128xbf16>,
      %69 = arith.truncf %63 : vector<32x128xf32> to vector<32x128xbf16>
      %70 = arith.index_cast %arg2 : i32 to index
      %c0_42 = arith.constant 0 : index
      %c0_43 = arith.constant 0 : index
      %71 = vector.load %arg12[%70, %c0_42, %c0_43] : memref<2x32x128xbf16, #tpu.memory_space<vmem>>, vector<1x32x128xbf16>
      %72 = vector.shape_cast %71 : vector<1x32x128xbf16> to vector<32x128xbf16>
      %73 = vector.shape_cast %69 : vector<32x128xbf16> to vector<1x32x128xbf16>
      tpu.vector_store %arg12[%70, %c0_42, %c0_43], %73 {strides = array<i32>} : memref<2x32x128xbf16, #tpu.memory_space<vmem>>, vector<1x32x128xbf16>,
    } else {
    }
    %c0 = arith.constant 0 : index
    %c0_3 = arith.constant 0 : index
    %6 = vector.load %arg10[%c0, %c0_3] : memref<32x128xbf16, #tpu.memory_space<vmem>>, vector<32x128xbf16>
    %7 = arith.index_cast %arg2 : i32 to index
    %c0_4 = arith.constant 0 : index
    %c0_5 = arith.constant 0 : index
    %8 = vector.load %arg11[%7, %c0_4, %c0_5] : memref<2x32x128xbf16, #tpu.memory_space<vmem>>, vector<1x32x128xbf16>
    %9 = vector.shape_cast %8 : vector<1x32x128xbf16> to vector<32x128xbf16>
    %10 = arith.index_cast %arg2 : i32 to index
    %c0_6 = arith.constant 0 : index
    %c0_7 = arith.constant 0 : index
    %11 = vector.load %arg12[%10, %c0_6, %c0_7] : memref<2x32x128xbf16, #tpu.memory_space<vmem>>, vector<1x32x128xbf16>
    %12 = vector.shape_cast %11 : vector<1x32x128xbf16> to vector<32x128xbf16>
    %cst = arith.constant dense<0.000000e+00> : vector<128x128xf32>
    %13 = tpu.matmul %6, %9, %cst {dimension_numbers = #tpu.dot_dimension_numbers<[0], [0], [1], [1], [0, 1, 1, 1], [], []>} : vector<32x128xbf16>, vector<32x128xbf16>, vector<128x128xf32> -> vector<128x128xf32>
    %c0_8 = arith.constant 0 : index
    %c0_9 = arith.constant 0 : index
    %14 = vector.load %arg13[%c0_8, %c0_9] : memref<128x1xf32, #tpu.memory_space<vmem>>, vector<128x1xf32>
    %cst_10 = arith.constant dense<0xFF800000> : vector<128xf32>
    %15 = vector.multi_reduction <maximumf>, %13, %cst_10 [1] : vector<128x128xf32> to vector<128xf32>
    %16 = vector.shape_cast %15 : vector<128xf32> to vector<128x1xf32>
    %17 = arith.maximumf %14, %16 : vector<128x1xf32>
    %18 = arith.subf %14, %17 : vector<128x1xf32>
    %19 = math.exp %18 : vector<128x1xf32>
    %20 = vector.broadcast %17 : vector<128x1xf32> to vector<128x128xf32>
    %21 = arith.subf %13, %20 : vector<128x128xf32>
    %22 = math.exp %21 : vector<128x128xf32>
    %c0_11 = arith.constant 0 : index
    %c0_12 = arith.constant 0 : index
    %23 = vector.load %arg14[%c0_11, %c0_12] : memref<128x1xf32, #tpu.memory_space<vmem>>, vector<128x1xf32>
    %24 = arith.mulf %19, %23 : vector<128x1xf32>
    %cst_13 = arith.constant dense<0.000000e+00> : vector<128xf32>
    %25 = vector.multi_reduction <add>, %22, %cst_13 [1] : vector<128x128xf32> to vector<128xf32>
    %26 = vector.shape_cast %25 : vector<128xf32> to vector<128x1xf32>
    %27 = arith.addf %24, %26 : vector<128x1xf32>
    %c0_14 = arith.constant 0 : index
    %c0_15 = arith.constant 0 : index
    %28 = vector.load %arg14[%c0_14, %c0_15] : memref<128x1xf32, #tpu.memory_space<vmem>>, vector<128x1xf32>
    tpu.vector_store %arg14[%c0_14, %c0_15], %27 {strides = array<i32>} : memref<128x1xf32, #tpu.memory_space<vmem>>, vector<128x1xf32>,
    %c0_16 = arith.constant 0 : index
    %c0_17 = arith.constant 0 : index
    %29 = vector.load %arg15[%c0_16, %c0_17] : memref<128x32xf32, #tpu.memory_space<vmem>>, vector<128x32xf32>
    %30 = vector.broadcast %19 : vector<128x1xf32> to vector<128x32xf32>
    %31 = arith.mulf %30, %29 : vector<128x32xf32>
    %32 = arith.truncf %22 : vector<128x128xf32> to vector<128x128xbf16>
    %cst_18 = arith.constant dense<0.000000e+00> : vector<128x32xf32>
    %33 = tpu.matmul %32, %12, %cst_18 {dimension_numbers = #tpu.dot_dimension_numbers<[1], [1], [0], [0], [0, 0, 1, 0], [], []>} : vector<128x128xbf16>, vector<32x128xbf16>, vector<128x32xf32> -> vector<128x32xf32>
    %34 = arith.addf %31, %33 : vector<128x32xf32>
    %c0_19 = arith.constant 0 : index
    %c0_20 = arith.constant 0 : index
    %35 = vector.load %arg15[%c0_19, %c0_20] : memref<128x32xf32, #tpu.memory_space<vmem>>, vector<128x32xf32>
    tpu.vector_store %arg15[%c0_19, %c0_20], %34 {strides = array<i32>} : memref<128x32xf32, #tpu.memory_space<vmem>>, vector<128x32xf32>,
    %c0_21 = arith.constant 0 : index
    %c0_22 = arith.constant 0 : index
    %36 = vector.load %arg13[%c0_21, %c0_22] : memref<128x1xf32, #tpu.memory_space<vmem>>, vector<128x1xf32>
    tpu.vector_store %arg13[%c0_21, %c0_22], %17 {strides = array<i32>} : memref<128x1xf32, #tpu.memory_space<vmem>>, vector<128x1xf32>,
    %c1_i32 = arith.constant 1 : i32
    %37 = arith.cmpi eq, %arg2, %c1_i32 : i32
    %38 = arith.extui %37 : i1 to i32
    %c0_i32_23 = arith.constant 0 : i32
    %39 = arith.cmpi ne, %38, %c0_i32_23 : i32
    scf.if %39 {
      %c0_24 = arith.constant 0 : index
      %c0_25 = arith.constant 0 : index
      %40 = vector.load %arg14[%c0_24, %c0_25] : memref<128x1xf32, #tpu.memory_space<vmem>>, vector<128x1xf32>
      %41 = tpu.reciprocal %40 {approx = true} : vector<128x1xf32> -> vector<128x1xf32>
      %c0_26 = arith.constant 0 : index
      %c0_27 = arith.constant 0 : index
      %42 = vector.load %arg15[%c0_26, %c0_27] : memref<128x32xf32, #tpu.memory_space<vmem>>, vector<128x32xf32>
      %43 = vector.broadcast %41 : vector<128x1xf32> to vector<128x32xf32>
      %44 = arith.mulf %42, %43 : vector<128x32xf32>
      %45 = arith.truncf %44 : vector<128x32xf32> to vector<128x32xbf16>
      %c3 = arith.constant 3 : index
      %c0_28 = arith.constant 0 : index
      %c0_29 = arith.constant 0 : index
      %46 = vector.load %arg7[%c3, %c0_28, %c0_29] : memref<4x32x32xbf16, #tpu.memory_space<vmem>>, vector<1x32x32xbf16>
      %47 = vector.shape_cast %46 : vector<1x32x32xbf16> to vector<32x32xbf16>
      %cst_30 = arith.constant dense<0.000000e+00> : vector<32x128xf32>
      %48 = tpu.matmul %47, %45, %cst_30 {dimension_numbers = #tpu.dot_dimension_numbers<[1], [1], [0], [0], [0, 0, 1, 0], [], []>} : vector<32x32xbf16>, vector<128x32xbf16>, vector<32x128xf32> -> vector<32x128xf32>
      %c0_31 = arith.constant 0 : index
      %c3_32 = arith.constant 3 : index
      %49 = vector.load %arg8[%c0_31, %c3_32] : memref<32x4xf32, #tpu.memory_space<vmem>>, vector<32x1xf32>
      %50 = vector.broadcast %49 : vector<32x1xf32> to vector<32x128xf32>
      %51 = arith.addf %48, %50 : vector<32x128xf32>
      %c0_33 = arith.constant 0 : index
      %c0_34 = arith.constant 0 : index
      %c0_35 = arith.constant 0 : index
      %52 = vector.load %arg3[%c0_33, %c0_34, %c0_35] : memref<1x32x128xbf16, #tpu.memory_space<vmem>>, vector<1x32x128xbf16>
      %53 = vector.shape_cast %52 : vector<1x32x128xbf16> to vector<32x128xbf16>
      %54 = arith.extf %53 : vector<32x128xbf16> to vector<32x128xf32>
      %55 = arith.addf %51, %54 : vector<32x128xf32>
      %c0_36 = arith.constant 0 : index
      %c0_37 = arith.constant 0 : index
      %c0_38 = arith.constant 0 : index
      %56 = vector.load %arg9[%c0_36, %c0_37, %c0_38] : memref<1x32x128xf32, #tpu.memory_space<vmem>>, vector<1x32x128xf32>
      %57 = vector.shape_cast %56 : vector<1x32x128xf32> to vector<32x128xf32>
      %58 = vector.shape_cast %55 : vector<32x128xf32> to vector<1x32x128xf32>
      tpu.vector_store %arg9[%c0_36, %c0_37, %c0_38], %58 {strides = array<i32>} : memref<1x32x128xf32, #tpu.memory_space<vmem>>, vector<1x32x128xf32>,
    } else {
    }
    return
  }
  func.func @transform_0(%arg0: i32, %arg1: i32, %arg2: i32) -> (i32, i32, i32) {
    %c0_i32 = arith.constant 0 : i32
    %c0_i32_0 = arith.constant 0 : i32
    return %arg0, %c0_i32, %arg1 : i32, i32, i32
  }
  func.func @transform_1(%arg0: i32, %arg1: i32, %arg2: i32) -> (i32, i32, i32) {
    %c0_i32 = arith.constant 0 : i32
    %c0_i32_0 = arith.constant 0 : i32
    return %arg0, %c0_i32, %arg2 : i32, i32, i32
  }
  func.func @transform_2(%arg0: i32, %arg1: i32, %arg2: i32) -> (i32, i32, i32) {
    %c0_i32 = arith.constant 0 : i32
    %c0_i32_0 = arith.constant 0 : i32
    %c0_i32_1 = arith.constant 0 : i32
    return %arg0, %c0_i32, %c0_i32_0 : i32, i32, i32
  }
  func.func @transform_3(%arg0: i32, %arg1: i32, %arg2: i32) -> (i32, i32, i32) {
    %c0_i32 = arith.constant 0 : i32
    %c0_i32_0 = arith.constant 0 : i32
    %c0_i32_1 = arith.constant 0 : i32
    return %arg0, %c0_i32, %c0_i32_0 : i32, i32, i32
  }
  func.func @transform_4(%arg0: i32, %arg1: i32, %arg2: i32) -> (i32, i32, i32) {
    %c0_i32 = arith.constant 0 : i32
    %c0_i32_0 = arith.constant 0 : i32
    %c0_i32_1 = arith.constant 0 : i32
    %c0_i32_2 = arith.constant 0 : i32
    return %c0_i32, %c0_i32_0, %c0_i32_1 : i32, i32, i32
  }
  func.func @transform_5(%arg0: i32, %arg1: i32, %arg2: i32) -> (i32, i32) {
    %c0_i32 = arith.constant 0 : i32
    %c0_i32_0 = arith.constant 0 : i32
    %c0_i32_1 = arith.constant 0 : i32
    return %c0_i32, %c0_i32_0 : i32, i32
  }
  func.func @transform_6(%arg0: i32, %arg1: i32, %arg2: i32) -> (i32, i32, i32) {
    %c0_i32 = arith.constant 0 : i32
    %c0_i32_0 = arith.constant 0 : i32
    return %arg0, %c0_i32, %arg1 : i32, i32, i32
  }
}

</mosaic_0001>

<bundles_post_ra>
// kernel: tpu_custom_call.1
= control target key start
LH: loop header
LB: loop body
LE: loop exit
PB: predicated region body
PF: predicated region fallthrough
CT: control target
= control target key end

     0   :  { %s3382_s0 = inlined_call_operand.vmem [shape: bf16[2,32,256], index: 0, kind: input, shape index: {}]   ;;  %s3383_s1 = inlined_call_operand.vmem [shape: bf16[2,32,256], index: 1, kind: input, shape index: {}]   ;;  %s3384_s2 = inlined_call_operand.vmem [shape: f32[2,32,2], index: 2, kind: input, shape index: {}]   ;;  %s3385_s3 = inlined_call_operand.vmem [shape: f32[2,32,2], index: 3, kind: input, shape index: {}]   ;;  %s3386_s4 = inlined_call_operand.hbm [shape: bf16[4,32,32], index: 4, kind: input, shape index: {}]   ;;  %s3387_s5 = inlined_call_operand.vmem [shape: f32[32,4], index: 5, kind: input, shape index: {}]   ;;  %s3388_s6 = inlined_call_operand.hbm [shape: f32[2,32,256], index: 6, kind: output, shape index: {}]  }
   0x1   :  { %3400 = sst [smem:[#allocation24_spill]] %s3386_s4 }
   0x2   :  { %3401 = sst [smem:[#allocation25_spill]] %s3387_s5 }
   0x3   :  { %3402 = sst [smem:[#allocation26_spill]] %s3388_s6 }
   0x4   :  { %11 = vsyncpa [#allocation11], 0 }
   0x5   :  { %12 = vsyncpa [#allocation12], 0 }
   0x6   :  { %14 = vsyncpa [#allocation12 + $0x1], 0  ;;  %s2659_s21 = smov 0   ;;  %s2661_s22 = smov 0  }
   0x7   :  { %s2663_s23 = smov 0   ;;  %s2665_s24 = smov 0  }
   0x8   :  { %s2667_s25 = smov 0   ;;  %s2669_s26 = smov 0  }
   0x9   :  { %s2671_s27 = smov 0   ;;  %s2673_s28 = smov 0  }
   0xa   :  { %s2675_s29 = smov 0   ;;  %s2677_s30 = smov 0  }
   0xb   :  { %s2679_s7 = smov 0   ;;  %s2681_s8 = smov 0  }
   0xc LB: > { %3403 = sst [smem:[#allocation16_spill]] %s2562_s21  ;;  %s3392_s9 = sadd.s32 4294967295, %s2606_s8   ;;  %s2606_s8 = sphi %s2681_s8, %s20_s8   ;;  %s2602_s7 = sphi %s2679_s7, %s3442_s7   ;;  %s2598_s30 = sphi %s2677_s30, %s3441_s30   ;;  %s2594_s29 = sphi %s2675_s29, %s3440_s29   ;;  %s2590_s28 = sphi %s2673_s28, %s3439_s28   ;;  %s2586_s27 = sphi %s2671_s27, %s3438_s27   ;;  %s2582_s26 = sphi %s2669_s26, %s3437_s26   ;;  %s2578_s25 = sphi %s2667_s25, %s3436_s25   ;;  %s2574_s24 = sphi %s2665_s24, %s3435_s24   ;;  %s2570_s23 = sphi %s2663_s23, %s3434_s23   ;;  %s2566_s22 = sphi %s2661_s22, %s3433_s22   ;;  %s2562_s21 = sphi %s2659_s21, %s3432_s21  }
   0xd   : > { %3404 = sst [smem:[#allocation17_spill]] %s2586_s27  ;;  %s1994_s10 = sadd.s32 4294967294, %s2606_s8  }
   0xe   : > { %s32_s11 = sadd.s32 1, %s2594_s29  ;;  %s35_s12 = sadd.s32 1, %s2598_s30 }
   0xf   : > { %p33_p0 = scmp.ge.s32.totalorder %s32_s11, 2  ;;  %s39_s13 = sadd.s32 1, %s2602_s7 }
  0x10   : > { %s48_s14 = sadd.s32 1, %s2578_s25  ;;  %p55_p1 = scmp.ne.s32.totalorder %s2578_s25, %s2574_s24 }
  0x11   : > { %s3444_s11 = smov (%p33_p0, %s32_s11), 0  ;;  %s3446_s12 = smov (!%p33_p0, %s35_s12), %s2598_s30 }
  0x12   : > { %3405 = sst [smem:[#allocation18_spill]] %s3444_s11  ;;  %p56_p2 = scmp.eq.s32.totalorder %s2606_s8, 0 }
  0x13   : > { %s72_s15 = ssub.s32 %s2594_s29, %s3444_s11  ;;  %p37_p3 = scmp.ge.s32.totalorder %s3446_s12, 2 }
  0x14   : > { %s76_s16 = sadd.s32 1, %s2570_s23  ;;  %p2737_p4 = por %p56_p2, %p55_p1 }
  0x15   : > { %p83_p5 = scmp.ne.s32.totalorder %s2570_s23, %s2566_s22  ;;  %s3448_s12 = smov (%p37_p3, %s3446_s12), 0 }
  0x16   : > { %3407 = sst [smem:[#allocation19_spill]] %s3448_s12  ;;  %s3450_s13 = smov (!%p37_p3, %s39_s13), %s2602_s7 }
  0x17   : > { %s44_s18 = ssub.s32 %s2598_s30, %s3448_s12  ;;  %p2748_p6 = por %p83_p5, %p56_p2 }
  0x18   : > { %p41_p7 = scmp.ge.s32.totalorder %s3450_s13, 2  ;;  %p209_p8 = scmp.eq.s32.totalorder %s3392_s9, 7 }
  0x19   : > { %p214_p9 = scmp.ne.s32.totalorder %s2574_s24, %s2562_s21  ;;  %p215_p10 = scmp.eq.s32.totalorder %s1994_s10, 7 }
  0x1a   : > { %s3452_s13 = smov (%p41_p7, %s3450_s13), 0  ;;  %p2761_p11 = por %p209_p8, %p55_p1 }
  0x1b   : > { %3409 = sst [smem:[#allocation20_spill]] %s3452_s13  ;;  %p2765_p12 = por %p215_p10, %p214_p9 }
  0x1c   : > { %s3410_s20 = scalar_select %p2761_p11, 1, 0 }
  0x1d   : > { %s43_s11 = ssub.s32 %s2602_s7, %s3452_s13  ;;  %p1995_p13 = scmp.ge.s32.totalorder %s2606_s8, 1 }
  0x1e   : > { %3411 = sst [smem:[#allocation21_spill]] %s3410_s20  ;;  %s45_s6 = sor.u32 %s44_s18, %s43_s11 }
  0x1f   : > { %s73_s27 = sor.u32 %s72_s15, %s43_s11  ;;  %p46_p0 = scmp.eq.s32.totalorder %s45_s6, 0 }
  0x20   : > { %p74_p2 = scmp.eq.s32.totalorder %s73_s27, 0  ;;  %p222_p3 = scmp.lt.s32.totalorder %s2606_s8, 9 }
  0x21   : > { %s2774_s10 = scalar_select %p46_p0, %s2578_s25, %s48_s14  }
  0x22   : > { %s2777_s9 = scalar_select %p74_p2, %s2570_s23, %s76_s16  }
  0x23   : > { %3413 = sst [smem:[#allocation22_spill]] %s2774_s10  ;;  %p2779_p5 = pnand %p1995_p13, %p222_p3 }
  0x24   : > { %3414 = sst [smem:[#allocation23_spill]] %s2777_s9  ;;  %s3416_s20 = sadd.s32 4294967295, %s2606_s8  }
  0x25   : > { %p2785_p1 = scmp.eq.s32.totalorder %s3416_s20, 0  ;;  %s3418_s4 = sld [smem:[#allocation24_spill]] }
  0x26   : > { %p2204_p7 = pneg %p2779_p5  ;;  %s2608_s27 = smov [#allocation10]  }
  0x27   : > { %s235_s11 = sshll.u32 %s2608_s27, 4  ;;  %s2609_s14 = smov 64   ;;  %s236_s11 = int_to_ptr.vmem [resolvable:$true] %s235_s11 }
  0x28   : > { %p2205_p8 = pnand %p2785_p1, %p2204_p7  ;;  %s2610_s15 = smov 4  }
  0x29   : > { %p1997_p9 = scmp.ge.s32.totalorder %s2606_s8, 8 }
  0x2b   : > { %s233_s6 = sshll.u32 %s3418_s4, 4  ;;  %248 = sbr.rel (%p1997_p9) target bundleno = 68 (0x44), region = 24  ;;  %s234_s6 = int_to_ptr.hbm [resolvable:$true] %s233_s6 }
  0x2c   : > { %2207 = dma.hbm_to_vmem [thread:$0]  (!%p2205_p8), %s234_s6, 1024, %s236_s11, [#allocation11], %s2609_s14, %s2609_s14, %s2610_s15  }
  0x30   : > { %251 = sbr.rel (!%p2737_p4) target bundleno = 58 (0x3a), region = 28  ;;  %s253_s13 = sand.u32 (%p2737_p4), 1, %s2578_s25  }
  0x31   : > { %s1999_s16 = sshll.u32 (%p2737_p4), %s2602_s7, 3  ;;  %s1998_s20 = sshll.u32 (%p2737_p4), %s253_s13, 4 }
  0x32   : > { %s257_s18 = sadd.s32 (%p2737_p4), %s2598_s30, %s1999_s16  ;;  %s255_s6 = scalar_lea.vmem (%p2737_p4), [#allocation8], %s1998_s20 }
  0x33   : > { %s2000_s27 = sshll.u32 (%p2737_p4), %s257_s18, 2 }
  0x34   : > { %s259_s9 = scalar_lea.vmem (%p2737_p4), %s3382_s0, %s2000_s27 }
  0x35   : > { %v276_v0 = vld [vmem:[%s259_s9] sm:$0xf]  ;;  %v278_v1 = vld [vmem:[%s259_s9 + $0x8] sm:$0xf]  ;;  %v280_v2 = vld [vmem:[%s259_s9 + $0x10] sm:$0xf] }
  0x36   : > { %277 = vst [vmem:[%s255_s6] sm:$0xf] %v276_v0  ;;  %v282_v3 = vld [vmem:[%s259_s9 + $0x18] sm:$0xf] }
  0x37   : > { %279 = vst [vmem:[%s255_s6 + $0x4] sm:$0xf] %v278_v1 }
  0x38   : > { %281 = vst [vmem:[%s255_s6 + $0x8] sm:$0xf] %v280_v2 }
  0x39   : > { %283 = vst [vmem:[%s255_s6 + $0xc] sm:$0xf] %v282_v3 }
  0x3a PF: > { %315 = sbr.rel (!%p2748_p6) target bundleno = 68 (0x44), region = 69  ;;  %s317_s17 = sand.u32 (%p2748_p6), 1, %s2570_s23  }
  0x3b   : > { %s2002_s11 = sshll.u32 (%p2748_p6), %s2602_s7, 3  ;;  %s2001_s4 = sshll.u32 (%p2748_p6), %s317_s17, 4 }
  0x3c   : > { %s321_s10 = sadd.s32 (%p2748_p6), %s2594_s29, %s2002_s11  ;;  %s319_s9 = scalar_lea.vmem (%p2748_p6), [#allocation9], %s2001_s4 }
  0x3d   : > { %s2003_s14 = sshll.u32 (%p2748_p6), %s321_s10, 2 }
  0x3e   : > { %s323_s16 = scalar_lea.vmem (%p2748_p6), %s3383_s1, %s2003_s14 }
  0x3f   : > { %v340_v4 = vld [vmem:[%s323_s16] sm:$0xf]  ;;  %v342_v5 = vld [vmem:[%s323_s16 + $0x8] sm:$0xf]  ;;  %v344_v6 = vld [vmem:[%s323_s16 + $0x10] sm:$0xf] }
  0x40   : > { %341 = vst [vmem:[%s319_s9] sm:$0xf] %v340_v4  ;;  %v346_v7 = vld [vmem:[%s323_s16 + $0x18] sm:$0xf] }
  0x41   : > { %343 = vst [vmem:[%s319_s9 + $0x4] sm:$0xf] %v342_v5 }
  0x42   : > { %345 = vst [vmem:[%s319_s9 + $0x8] sm:$0xf] %v344_v6 }
  0x43   : > { %347 = vst [vmem:[%s319_s9 + $0xc] sm:$0xf] %v346_v7 }
  0x44 PF: > { %398 = sbr.rel (%p2779_p5) target bundleno = 1844 (0x734), region = 118  ;;  %s2816_s19 = sand.u32 (!%p2779_p5), 1, %s2574_s24  }
  0x45   : > { %s408_s20 = sand.u32 (!%p2779_p5), 1, %s2566_s22   ;;  %s2005_s18 = sshll.u32 (!%p2779_p5), %s2816_s19, 4 }
  0x46   : > { %s2006_s27 = sshll.u32 (!%p2779_p5), %s408_s20, 4  ;;  %s2820_s6 = scalar_lea.vmem (!%p2779_p5), [#allocation8], %s2005_s18 }
  0x47   : > { %s2822_s17 = scalar_lea.vmem (!%p2779_p5), [#allocation9], %s2006_s27 }
  0x49   : > { %2553 = dma.done.wait (%p2785_p1), [#allocation11], 1024  }
  0x4a   : > { %2555 = vsyncadd (%p2785_p1), [#allocation11], 4294966272  ;;  %s2008_s21 = sshll.u32 %s2816_s19, 5  ;;  %p456_p4 = scmp.lt.s32.totalorder %s2590_s28, 1 }
  0x4b   : > { %s2839_s9 = scalar_lea.vmem [#allocation13], %s2008_s21  ;;  %p2013_p6 = scmp.ne.s32.totalorder %s2582_s26, 0 }
  0x4c   : > { %s457_s11 = scalar_select %p456_p4, %s2590_s28, 1 }
  0x4d   : > { %470 = sbr.rel (%p2013_p6) target bundleno = 363 (0x16b), region = 134  ;;  %s3419_s18 = sld [smem:[#allocation25_spill]] (!%p2013_p6) }
  0x4e   : > { %s2107_s4 = sshll.u32 %s457_s11, 5 }
  0x4f   : > { %s460_s14 = scalar_lea.vmem %s3384_s2, %s2107_s4  ;;  %s2837_s16 = scalar_lea.vmem %s3385_s3, %s2107_s4 }
  0x52   : > { %v481_v8 = vld [vmem:[%s460_s14 + $0x10] sm:$0xff]  ;;  %v2611_v9 = vmov 1   ;;  %v2612_v10 = vmov 0   ;;  %v479_v11 = vld [vmem:[%s460_s14] sm:$0xff]  ;;  %v482_v12 = vld [vmem:[%s460_s14 + $0x18] sm:$0xff]  ;;  %vm601_vm0 = vcmask 7168  }
  0x53   : > { %2328 = vset.pattern.permute.xlu1 %v2611_v9  ;;  %2327 = vset.pattern.permute.xlu0 %v2612_v10  ;;  %v480_v13 = vld [vmem:[%s460_s14 + $0x8] sm:$0xff]  ;;  %v533_v14 = vld [vmem:[%s3419_s18] sm:$0xff]  ;;  %v535_v15 = vld [vmem:[%s3419_s18 + $0x10] sm:$0xff]  ;;  %v2613_v16 = vmov -inf   ;;  %v2614_v30 = vmov 0.0   ;;  %vm567_vm1 = vcmask 261120  }
  0x54   : > { %516 = vperm.xlu1 %2328, %v481_v8   ;;  %495 = vperm.xlu0 %2327, %v481_v8   ;;  %602 = vst.msk [vmem:[#allocation5] sm:$0xff] %vm601_vm0, %v2613_v16  ;;  %v2175_v19 = vld [vmem:[%s2820_s6 + $0x8] sm:$0xff]   ;;  %v2130_v24 = vld [vmem:[%s2820_s6] sm:$0xff]  }
  0x55   : > { %2329 = vset.pattern.permute.xlu2 %v2612_v10  ;;  %603 = vst.msk [vmem:[#allocation5 + $0x8] sm:$0xff] %vm601_vm0, %v2613_v16  ;;  %v2135_v20 = vunpack.c.l.bf16 %v2175_v19  ;;  %v2136_v22 = vunpack.c.h.bf16 %v2175_v19  ;;  %v534_v28 = vld [vmem:[%s3419_s18 + $0x8] sm:$0xff]  ;;  %v536_v29 = vld [vmem:[%s3419_s18 + $0x18] sm:$0xff]  ;;  %v2132_v31 = vunpack.c.h.bf16 %v2130_v24  ;;  %v2131_v34 = vunpack.c.l.bf16 %v2130_v24  ;;  %v2109_v44 = vld [vmem:[#allocation10] sm:$0xff] }
  0x56   : > { %485 = vperm.xlu2 %2329, %v479_v11   ;;  %604 = vst.msk [vmem:[#allocation5 + $0x10] sm:$0xff] %vm601_vm0, %v2613_v16  ;;  %v2110_v45 = vld [vmem:[#allocation10 + $0x8] sm:$0xff] }
  0x57   : > { %605 = vst.msk [vmem:[#allocation5 + $0x18] sm:$0xff] %vm601_vm0, %v2613_v16 }
  0x58   : > { %606 = vst.msk [vmem:[#allocation5 + $0x20] sm:$0xff] %vm601_vm0, %v2613_v16 }
  0x59   : > { %607 = vst.msk [vmem:[#allocation5 + $0x28] sm:$0xff] %vm601_vm0, %v2613_v16 }
  0x5a   : > { %608 = vst.msk [vmem:[#allocation5 + $0x30] sm:$0xff] %vm601_vm0, %v2613_v16 }
  0x5b   : > { %609 = vst.msk [vmem:[#allocation5 + $0x38] sm:$0xff] %vm601_vm0, %v2613_v16 }
  0x5c   : > { %520 = vperm.xlu1 %2328, %v482_v12   ;;  %500 = vperm.xlu0 %2327, %v482_v12   ;;  %610 = vst.msk [vmem:[#allocation5 + $0x40] sm:$0xff] %vm601_vm0, %v2613_v16 }
  0x5d   : > { %611 = vst.msk [vmem:[#allocation5 + $0x48] sm:$0xff] %vm601_vm0, %v2613_v16 }
  0x5e   : > { %490 = vperm.xlu2 %2329, %v480_v13   ;;  %612 = vst.msk [vmem:[#allocation5 + $0x50] sm:$0xff] %vm601_vm0, %v2613_v16 }
  0x5f   : > { %613 = vst.msk [vmem:[#allocation5 + $0x58] sm:$0xff] %vm601_vm0, %v2613_v16 }
  0x60   : > { %614 = vst.msk [vmem:[#allocation5 + $0x60] sm:$0xff] %vm601_vm0, %v2613_v16 }
  0x61   : > { %615 = vst.msk [vmem:[#allocation5 + $0x68] sm:$0xff] %vm601_vm0, %v2613_v16 }
  0x62   : > { %616 = vst.msk [vmem:[#allocation5 + $0x70] sm:$0xff] %vm601_vm0, %v2613_v16 }
  0x63   : > { %617 = vst.msk [vmem:[#allocation5 + $0x78] sm:$0xff] %vm601_vm0, %v2613_v16 }
  0x64   : > { %2330 = vset.pattern.permute.xlu0 %v2611_v9  ;;  %512 = vperm.xlu1 %2328, %v480_v13   ;;  %618 = vst.msk [vmem:[#allocation6] sm:$0xff] %vm601_vm0, %v2614_v30 }
  0x65   : > { %508 = vperm.xlu0 %2330, %v479_v11   ;;  %619 = vst.msk [vmem:[#allocation6 + $0x8] sm:$0xff] %vm601_vm0, %v2614_v30 }
  0x66   : > { %539 = vperm.xlu2 %2329, %v533_v14   ;;  %620 = vst.msk [vmem:[#allocation6 + $0x10] sm:$0xff] %vm601_vm0, %v2614_v30 }
  0x67   : > { %621 = vst.msk [vmem:[#allocation6 + $0x18] sm:$0xff] %vm601_vm0, %v2614_v30 }
  0x68   : > { %622 = vst.msk [vmem:[#allocation6 + $0x20] sm:$0xff] %vm601_vm0, %v2614_v30 }
  0x69   : > { %623 = vst.msk [vmem:[#allocation6 + $0x28] sm:$0xff] %vm601_vm0, %v2614_v30 }
  0x6a   : > { %624 = vst.msk [vmem:[#allocation6 + $0x30] sm:$0xff] %vm601_vm0, %v2614_v30 }
  0x6b   : > { %625 = vst.msk [vmem:[#allocation6 + $0x38] sm:$0xff] %vm601_vm0, %v2614_v30 }
  0x6c   : > { %2331 = vset.pattern.permute.xlu1 %v2612_v10  ;;  %626 = vst.msk [vmem:[#allocation6 + $0x40] sm:$0xff] %vm601_vm0, %v2614_v30 }
  0x6d   : > { %2332 = vset.pattern.permute.xlu0 %v2612_v10  ;;  %544 = vperm.xlu1 %2331, %v534_v28   ;;  %627 = vst.msk [vmem:[#allocation6 + $0x48] sm:$0xff] %vm601_vm0, %v2614_v30 }
  0x6e   : > { %549 = vperm.xlu2 %2329, %v535_v15   ;;  %554 = vperm.xlu0 %2332, %v536_v29   ;;  %628 = vst.msk [vmem:[#allocation6 + $0x50] sm:$0xff] %vm601_vm0, %v2614_v30 }
  0x6f   : > { %629 = vst.msk [vmem:[#allocation6 + $0x58] sm:$0xff] %vm601_vm0, %v2614_v30 }
  0x70   : > { %630 = vst.msk [vmem:[#allocation6 + $0x60] sm:$0xff] %vm601_vm0, %v2614_v30 }
  0x71   : > { %631 = vst.msk [vmem:[#allocation6 + $0x68] sm:$0xff] %vm601_vm0, %v2614_v30 }
  0x72   : > { %632 = vst.msk [vmem:[#allocation6 + $0x70] sm:$0xff] %vm601_vm0, %v2614_v30 }
  0x73   : > { %633 = vst.msk [vmem:[#allocation6 + $0x78] sm:$0xff] %vm601_vm0, %v2614_v30 }
  0x74   : > { %634 = vst.msk [vmem:[#allocation7] sm:$0xff] %vm567_vm1, %v2614_v30 }
  0x75   : > { %635 = vst.msk [vmem:[#allocation7 + $0x8] sm:$0xff] %vm567_vm1, %v2614_v30 }
  0x76   : > { %636 = vst.msk [vmem:[#allocation7 + $0x10] sm:$0xff] %vm567_vm1, %v2614_v30 }
  0x77   : > { %637 = vst.msk [vmem:[#allocation7 + $0x18] sm:$0xff] %vm567_vm1, %v2614_v30 }
  0x78   : > { %638 = vst.msk [vmem:[#allocation7 + $0x20] sm:$0xff] %vm567_vm1, %v2614_v30 }
  0x79   : > { %639 = vst.msk [vmem:[#allocation7 + $0x28] sm:$0xff] %vm567_vm1, %v2614_v30 }
  0x7a   : > { %640 = vst.msk [vmem:[#allocation7 + $0x30] sm:$0xff] %vm567_vm1, %v2614_v30 }
  0x7b   : > { %641 = vst.msk [vmem:[#allocation7 + $0x38] sm:$0xff] %vm567_vm1, %v2614_v30 }
  0x7c   : > { %642 = vst.msk [vmem:[#allocation7 + $0x40] sm:$0xff] %vm567_vm1, %v2614_v30 }
  0x7d   : > { %643 = vst.msk [vmem:[#allocation7 + $0x48] sm:$0xff] %vm567_vm1, %v2614_v30 }
  0x7e   : > { %644 = vst.msk [vmem:[#allocation7 + $0x50] sm:$0xff] %vm567_vm1, %v2614_v30 }
  0x7f   : > { %645 = vst.msk [vmem:[#allocation7 + $0x58] sm:$0xff] %vm567_vm1, %v2614_v30 }
  0x80   : > { %646 = vst.msk [vmem:[#allocation7 + $0x60] sm:$0xff] %vm567_vm1, %v2614_v30 }
  0x81   : > { %647 = vst.msk [vmem:[#allocation7 + $0x68] sm:$0xff] %vm567_vm1, %v2614_v30 }
  0x82   : > { %648 = vst.msk [vmem:[#allocation7 + $0x70] sm:$0xff] %vm567_vm1, %v2614_v30 }
  0x83   : > { %649 = vst.msk [vmem:[#allocation7 + $0x78] sm:$0xff] %vm567_vm1, %v2614_v30 }
  0xb0   : > { %v486_v21 = vpop.permute.xlu2 %485 }
  0xb1   : > { %v503_v38 = vsub.f32 %v2131_v34, %v486_v21 }
  0xb8   : > { %v491_v36 = vpop.permute.xlu2 %490 }
  0xb9   : > { %v504_v37 = vsub.f32 %v2132_v31, %v491_v36 }
  0xc0   : > { %v540_v46 = vpop.permute.xlu2 %539 }
  0xc6   : > { %v517_v17 = vpop.permute.xlu1 %516  ;;  %v496_v18 = vpop.permute.xlu0 %495 }
  0xc7   : > { %v505_v23 = vsub.f32 %v2135_v20, %v496_v18 }
  0xc8   : > { %v550_v51 = vpop.permute.xlu2 %549 }
  0xc9   : > { %v525_v32 = vmul.f32 %v517_v17, %v505_v23 }
  0xce   : > { %v521_v25 = vpop.permute.xlu1 %520  ;;  %v501_v26 = vpop.permute.xlu0 %500 }
  0xcf   : > { %v506_v27 = vsub.f32 %v2136_v22, %v501_v26 }
  0xd1   : > { %v526_v33 = vmul.f32 %v521_v25, %v506_v27 }
  0xd3   : > { %v532_v35 = vpack.c.bf16 %v526_v33, %v525_v32 }
  0xd5   : > { %580 = vmatpush.bf16.msra.mxu0 %v532_v35  ;;  %2180 = vmatpush.bf16.msra.mxu1 %v532_v35 }
  0xd6   : > { %v513_v39 = vpop.permute.xlu1 %512 }
  0xd7   : > { %v524_v40 = vmul.f32 %v513_v39, %v504_v37  ;;  %v509_v41 = vpop.permute.xlu0 %508 }
  0xd8   : > { %v523_v42 = vmul.f32 %v509_v41, %v503_v38 }
  0xda   : > { %v531_v43 = vpack.c.bf16 %v524_v40, %v523_v42 }
  0xdc   : > { %581 = vmatpush.bf16.msra.mxu0 %v531_v43  ;;  %2181 = vmatpush.bf16.msra.mxu1 %v531_v43 }
  0xdf   : > { %2022 = vmatmul.msk.bf16.vlgmr.msra.gmra.mxu0 %vm567_vm1, %v2109_v44  ;;  %2023 = vmatmul.msk.bf16.vlgmr.msra.gmra.mxu1 %vm567_vm1, %v2110_v45  ;;  %v545_v49 = vpop.permute.xlu1 %544 }
  0xe0   : > { %v555_v50 = vpop.permute.xlu0 %554 }
 0x15c   : > { %v583_v47 = vpop.f32.mrf.mxu0  ;;  %v588_v48 = vpop.f32.mrf.mxu1 }
 0x15d   : > { %v584_v54 = vadd.f32 %v583_v47, %v540_v46  ;;  %v589_v55 = vadd.f32 %v588_v48, %v550_v51 }
 0x164   : > { %v585_v52 = vpop.f32.mrf.mxu0  ;;  %v590_v53 = vpop.f32.mrf.mxu1 }
 0x165   : > { %v586_v56 = vadd.f32 %v585_v52, %v545_v49  ;;  %v591_v57 = vadd.f32 %v590_v53, %v555_v50 }
 0x167   : > { %v2140_v58 = vpack.c.bf16 %v586_v56, %v584_v54  ;;  %v2145_v59 = vpack.c.bf16 %v591_v57, %v589_v55 }
 0x169   : > { %2141 = vst [vmem:[#allocation2] sm:$0xff] %v2140_v58  }
 0x16a   : > { %2176 = vst [vmem:[#allocation2 + $0x8] sm:$0xff] %v2145_v59  }
 0x16b PF: > { %s3420_s14 = sld [smem:[#allocation17_spill]] }
 0x171   : > { %p2024_p10 = scmp.ne.s32.totalorder %s3420_s14, 0 }
 0x172   : > { %s3421_s5 = sld [smem:[#allocation25_spill]] (!%p2024_p10) }
 0x173   : > { %653 = sbr.rel (%p2024_p10) target bundleno = 662 (0x296), region = 138 }
 0x178   : > { %v664_v60 = vld [vmem:[%s2837_s16 + $0x10] sm:$0xff]  ;;  %v2615_v61 = vmov 1   ;;  %v2616_v62 = vmov 0   ;;  %v662_v63 = vld [vmem:[%s2837_s16] sm:$0xff]  ;;  %v665_v0 = vld [vmem:[%s2837_s16 + $0x18] sm:$0xff]  ;;  %vm751_vm2 = vcmask 261120  }
 0x179   : > { %2334 = vset.pattern.permute.xlu1 %v2615_v61  ;;  %2333 = vset.pattern.permute.xlu0 %v2616_v62  ;;  %v663_v1 = vld [vmem:[%s2837_s16 + $0x8] sm:$0xff]  ;;  %v720_v3 = vld [vmem:[%s3421_s5 + $0x18] sm:$0xff]  ;;  %v2111_v5 = vld [vmem:[%s2822_s17] sm:$0xff]  ;;  %v2617_v10 = vmov 2  }
 0x17a   : > { %699 = vperm.xlu1 %2334, %v664_v60   ;;  %678 = vperm.xlu0 %2333, %v664_v60   ;;  %v718_v2 = vld [vmem:[%s3421_s5 + $0x8] sm:$0xff]  ;;  %v2116_v6 = vld [vmem:[#allocation10 + $0x28] sm:$0xff]  ;;  %v2115_v7 = vld [vmem:[#allocation10 + $0x20] sm:$0xff] }
 0x17b   : > { %2335 = vset.pattern.permute.xlu2 %v2616_v62  ;;  %v2112_v4 = vld [vmem:[%s2822_s17 + $0x8] sm:$0xff]  ;;  %v717_v8 = vld [vmem:[%s3421_s5] sm:$0xff]  ;;  %v719_v9 = vld [vmem:[%s3421_s5 + $0x10] sm:$0xff] }
 0x17c   : > { %668 = vperm.xlu2 %2335, %v662_v63   ;;  %2184 = vmatpush.bf16.msra.mxu3 %v2112_v4  ;;  %v656_v13 = vld [vmem:[%s2822_s17 + $0x8] sm:$0xff]   ;;  %v654_v18 = vld [vmem:[%s2822_s17] sm:$0xff]   ;;  %s2117_s17 = sshll.u32 %s2582_s26, 4 }
 0x17d   : > { %832 = vmatpush.bf16.msra.mxu1 %v2112_v4  ;;  %v660_v15 = vunpack.c.l.bf16 %v656_v13  ;;  %v661_v16 = vunpack.c.h.bf16 %v656_v13  ;;  %v659_v23 = vunpack.c.h.bf16 %v654_v18  ;;  %v658_v25 = vunpack.c.l.bf16 %v654_v18  ;;  %v2113_v35 = vld [vmem:[#allocation10 + $0x10] sm:$0xff]  ;;  %v2114_v36 = vld [vmem:[#allocation10 + $0x18] sm:$0xff]  ;;  %s861_s4 = scalar_lea.vmem [#allocation4], %s2117_s17  ;;  %s851_s10 = scalar_lea.vmem [#allocation3], %s2117_s17 }
 0x180   : > { %2185 = vmatpush.bf16.msra.mxu3 %v2111_v5 }
 0x181   : > { %833 = vmatpush.bf16.msra.mxu1 %v2111_v5 }
 0x182   : > { %703 = vperm.xlu1 %2334, %v665_v0   ;;  %683 = vperm.xlu0 %2333, %v665_v0  }
 0x183   : > { %2052 = vmatmul.msk.bf16.vlgmr.msra.gmra.mxu3 %vm751_vm2, %v2116_v6 }
 0x184   : > { %673 = vperm.xlu2 %2335, %v663_v1   ;;  %2051 = vmatmul.msk.bf16.vlgmr.msra.gmra.mxu1 %vm751_vm2, %v2115_v7 }
 0x18a   : > { %2336 = vset.pattern.permute.xlu0 %v2615_v61  ;;  %695 = vperm.xlu1 %2334, %v663_v1  }
 0x18b   : > { %691 = vperm.xlu0 %2336, %v662_v63  }
 0x18c   : > { %2337 = vset.pattern.permute.xlu2 %v2615_v61 }
 0x18d   : > { %723 = vperm.xlu2 %2337, %v717_v8  }
 0x192   : > { %728 = vperm.xlu1 %2334, %v718_v2  }
 0x193   : > { %738 = vperm.xlu0 %2336, %v720_v3  }
 0x195   : > { %733 = vperm.xlu2 %2337, %v719_v9  }
 0x19a   : > { %2338 = vset.pattern.permute.xlu1 %v2617_v10 }
 0x19b   : > { %2340 = vset.pattern.permute.xlu0 %v2617_v10  ;;  %783 = vperm.xlu1 %2338, %v717_v8  }
 0x19c   : > { %791 = vperm.xlu0 %2340, %v719_v9  }
 0x19d   : > { %2339 = vset.pattern.permute.xlu2 %v2617_v10 }
 0x19e   : > { %787 = vperm.xlu2 %2339, %v718_v2  }
 0x1a3   : > { %795 = vperm.xlu1 %2338, %v720_v3  }
 0x1d6   : > { %v669_v14 = vpop.permute.xlu2 %668 }
 0x1d7   : > { %v686_v29 = vsub.f32 %v658_v25, %v669_v14 }
 0x1de   : > { %v674_v26 = vpop.permute.xlu2 %673 }
 0x1df   : > { %v687_v28 = vsub.f32 %v659_v23, %v674_v26 }
 0x1e7   : > { %v724_v37 = vpop.permute.xlu2 %723 }
 0x1ec   : > { %v700_v11 = vpop.permute.xlu1 %699  ;;  %v679_v12 = vpop.permute.xlu0 %678 }
 0x1ed   : > { %v688_v17 = vsub.f32 %v660_v15, %v679_v12 }
 0x1ef   : > { %v708_v22 = vmul.f32 %v700_v11, %v688_v17  ;;  %v734_v40 = vpop.permute.xlu2 %733 }
 0x1f4   : > { %v704_v19 = vpop.permute.xlu1 %703  ;;  %v684_v20 = vpop.permute.xlu0 %683 }
 0x1f5   : > { %v689_v21 = vsub.f32 %v661_v16, %v684_v20 }
 0x1f7   : > { %v709_v24 = vmul.f32 %v704_v19, %v689_v21 }
 0x1f8   : > { %v788_v46 = vpop.permute.xlu2 %787 }
 0x1f9   : > { %v716_v27 = vpack.c.bf16 %v709_v24, %v708_v22 }
 0x1fb   : > { %764 = vmatpush.bf16.msra.mxu0 %v716_v27  ;;  %2182 = vmatpush.bf16.msra.mxu2 %v716_v27 }
 0x1fc   : > { %v696_v30 = vpop.permute.xlu1 %695 }
 0x1fd   : > { %v707_v31 = vmul.f32 %v696_v30, %v687_v28  ;;  %v692_v32 = vpop.permute.xlu0 %691 }
 0x1fe   : > { %v706_v33 = vmul.f32 %v692_v32, %v686_v29 }
 0x200   : > { %v715_v34 = vpack.c.bf16 %v707_v31, %v706_v33 }
 0x201   : > { %v835_v42 = vpop.f32.mrf.mxu1 }
 0x202   : > { %765 = vmatpush.bf16.msra.mxu0 %v715_v34  ;;  %2183 = vmatpush.bf16.msra.mxu2 %v715_v34 }
 0x204   : > { %v729_v38 = vpop.permute.xlu1 %728 }
 0x205   : > { %2033 = vmatmul.msk.bf16.vlgmr.msra.gmra.mxu0 %vm751_vm2, %v2113_v35  ;;  %2034 = vmatmul.msk.bf16.vlgmr.msra.gmra.mxu2 %vm751_vm2, %v2114_v36  ;;  %v739_v39 = vpop.permute.xlu0 %738 }
 0x206   : > { %v840_v43 = vpop.f32.mrf.mxu3 }
 0x209   : > { %v837_v49 = vpop.f32.mrf.mxu1 }
 0x20a   : > { %v838_v51 = vadd.f32 %v837_v49, %v788_v46 }
 0x20d   : > { %v784_v41 = vpop.permute.xlu1 %783 }
 0x20e   : > { %v792_v44 = vpop.permute.xlu0 %791  ;;  %v836_v47 = vadd.f32 %v835_v42, %v784_v41  ;;  %v842_v50 = vpop.f32.mrf.mxu3 }
 0x20f   : > { %v841_v48 = vadd.f32 %v840_v43, %v792_v44 }
 0x210   : > { %v2160_v53 = vpack.c.bf16 %v838_v51, %v836_v47 }
 0x212   : > { %2161 = vst [vmem:[%s861_s4] sm:$0xff] %v2160_v53  }
 0x215   : > { %v796_v45 = vpop.permute.xlu1 %795 }
 0x216   : > { %v843_v52 = vadd.f32 %v842_v50, %v796_v45 }
 0x218   : > { %v2165_v54 = vpack.c.bf16 %v843_v52, %v841_v48 }
 0x21a   : > { %2178 = vst [vmem:[%s861_s4 + $0x8] sm:$0xff] %v2165_v54  }
 0x282   : > { %v767_v55 = vpop.f32.mrf.mxu0 }
 0x283   : > { %v768_v58 = vadd.f32 %v767_v55, %v724_v37 }
 0x288   : > { %v772_v56 = vpop.f32.mrf.mxu2 }
 0x289   : > { %v773_v62 = vadd.f32 %v772_v56, %v734_v40 }
 0x28a   : > { %v769_v57 = vpop.f32.mrf.mxu0 }
 0x28b   : > { %v770_v59 = vadd.f32 %v769_v57, %v729_v38 }
 0x28d   : > { %v2150_v60 = vpack.c.bf16 %v770_v59, %v768_v58 }
 0x28f   : > { %2151 = vst [vmem:[%s851_s10] sm:$0xff] %v2150_v60  }
 0x290   : > { %v774_v61 = vpop.f32.mrf.mxu2 }
 0x291   : > { %v775_v63 = vadd.f32 %v774_v61, %v739_v39 }
 0x293   : > { %v2155_v0 = vpack.c.bf16 %v775_v63, %v773_v62 }
 0x295   : > { %2177 = vst [vmem:[%s851_s10 + $0x8] sm:$0xff] %v2155_v0  }
 0x296 PF: > { %v2119_v1 = vld [vmem:[#allocation2] sm:$0xff]  ;;  %s2121_s22 = sshll.u32 %s2582_s26, 4  ;;  %v2120_v4 = vld [vmem:[#allocation2 + $0x8] sm:$0xff]  ;;  %vm923_vm3 = vcmask 261120   ;;  %v2618_v27 = vmov 0   ;;  %v2985_v28 = vld [vmem:[#allocation5] sm:$0xff] }
 0x297   : > { %895 = vxpose.xlu0.c.b16.start [1/2] (short) %v2119_v1, 128  ;;  %s872_s14 = scalar_lea.vmem [#allocation3], %s2121_s22  ;;  %2341 = vset.pattern.permute.xlu2 %v2618_v27  ;;  %vm1317_vm4 = vcmask 7168   ;;  %v2997_v33 = vld [vmem:[#allocation5 + $0x8] sm:$0xff]  ;;  %v999_v38 = vld [vmem:[#allocation5 + $0x10] sm:$0xff]  ;;  %v3010_v43 = vld [vmem:[#allocation5 + $0x18] sm:$0xff]  ;;  %s878_s15 = scalar_lea.vmem [#allocation4], %s2121_s22 }
 0x298   : > { %2342 = vset.pattern.permute.xlu1 %v2618_v27  ;;  %v3023_v48 = vld [vmem:[#allocation5 + $0x20] sm:$0xff]  ;;  %v3033_v52 = vld [vmem:[#allocation5 + $0x28] sm:$0xff]  ;;  %v3042_v56 = vld [vmem:[#allocation5 + $0x30] sm:$0xff]  ;;  %p2091_p13 = scmp.ne.s32.totalorder %s2582_s26, 1 }
 0x299   : > { %v3051_v60 = vld [vmem:[#allocation5 + $0x38] sm:$0xff]  ;;  %v3060_v0 = vld [vmem:[#allocation5 + $0x40] sm:$0xff]  ;;  %s3422_s5 = sld [smem:[#allocation25_spill]] (!%p2091_p13) }
 0x29c   : > { %v2123_v2 = vld [vmem:[%s872_s14 + $0x8] sm:$0xff]  ;;  %v2122_v3 = vld [vmem:[%s872_s14] sm:$0xff] }
 0x29d   : > { %954 = vmatpush.bf16.msra.mxu0 %v2123_v2  ;;  %2186 = vmatpush.bf16.msra.mxu3 %v2123_v2 }
 0x2a1   : > { %955 = vmatpush.bf16.msra.mxu0 %v2122_v3  ;;  %2187 = vmatpush.bf16.msra.mxu3 %v2122_v3 }
 0x2a7   : > { %896 = vxpose.xlu0.c.b16.end [2/2] (short) %v2120_v4, 128  ;;  %v1006_v4 = vld [vmem:[#allocation5 + $0x48] sm:$0xff] }
 0x30e   : > { %2343 = vset.pattern.permute.xlu0 %v2618_v27 }
 0x343   : > { %v903_v5 = vpop.trf.xlu0 }
 0x344   : > { %2075 = vmatmul.msk.bf16.vlgmr.msra.gmra.mxu0 %vm923_vm3, %v903_v5 }
 0x353   : > { %v904_v6 = vpop.trf.xlu0 }
 0x354   : > { %2076 = vmatmul.msk.bf16.gmra.mxu0 %vm923_vm3, %v904_v6 }
 0x363   : > { %v905_v7 = vpop.trf.xlu0 }
 0x364   : > { %2077 = vmatmul.msk.bf16.gmra.mxu0 %vm923_vm3, %v905_v7 }
 0x373   : > { %v906_v8 = vpop.trf.xlu0 }
 0x374   : > { %2078 = vmatmul.msk.bf16.gmra.mxu0 %vm923_vm3, %v906_v8 }
 0x383   : > { %v907_v9 = vpop.trf.xlu0 }
 0x384   : > { %2079 = vmatmul.msk.bf16.gmra.mxu0 %vm923_vm3, %v907_v9  ;;  %v3073_v9 = vld [vmem:[#allocation5 + $0x50] sm:$0xff] }
 0x393   : > { %v908_v10 = vpop.trf.xlu0 }
 0x394   : > { %2080 = vmatmul.msk.bf16.vlgmr.msra.gmra.mxu3 %vm923_vm3, %v908_v10 }
 0x3a3   : > { %v909_v11 = vpop.trf.xlu0 }
 0x3a4   : > { %2081 = vmatmul.msk.bf16.gmra.mxu3 %vm923_vm3, %v909_v11 }
 0x3b3   : > { %v910_v12 = vpop.trf.xlu0 }
 0x3b4   : > { %2082 = vmatmul.msk.bf16.gmra.mxu3 %vm923_vm3, %v910_v12 }
 0x3c1   : > { %v2943_v13 = vpop.f32.mrf.mxu0 }
 0x3c2   : > { %1013 = vmax.xlane.f32.xlu1 %v2943_v13 }
 0x3c9   : > { %v2946_v14 = vpop.f32.mrf.mxu0 }
 0x3ca   : > { %1015 = vmax.xlane.f32.xlu1 %v2946_v14 }
 0x3d1   : > { %v2949_v15 = vpop.f32.mrf.mxu0 }
 0x3d2   : > { %1017 = vmax.xlane.f32.xlu2 %v2949_v15 }
 0x3d9   : > { %v2952_v16 = vpop.f32.mrf.mxu0 }
 0x3da   : > { %1019 = vmax.xlane.f32.xlu2 %v2952_v16 }
 0x3e1   : > { %v2955_v17 = vpop.f32.mrf.mxu0 }
 0x3e2   : > { %1021 = vmax.xlane.f32.xlu1 %v2955_v17 }
 0x3e9   : > { %v2958_v18 = vpop.f32.mrf.mxu0 }
 0x3ea   : > { %1023 = vmax.xlane.f32.xlu2 %v2958_v18 }
 0x3f1   : > { %v2961_v19 = vpop.f32.mrf.mxu0 }
 0x3f2   : > { %1025 = vmax.xlane.f32.xlu0 %v2961_v19 }
 0x3f9   : > { %v2964_v20 = vpop.f32.mrf.mxu0 }
 0x3fa   : > { %1027 = vmax.xlane.f32.xlu1 %v2964_v20 }
 0x401   : > { %v2967_v21 = vpop.f32.mrf.mxu0 }
 0x402   : > { %1029 = vmax.xlane.f32.xlu2 %v2967_v21 }
 0x409   : > { %v2970_v22 = vpop.f32.mrf.mxu0 }
 0x40a   : > { %1031 = vmax.xlane.f32.xlu1 %v2970_v22 }
 0x417   : > { %v2973_v23 = vpop.f32.mrf.mxu3 }
 0x418   : > { %1033 = vmax.xlane.f32.xlu2 %v2973_v23 }
 0x41f   : > { %v2976_v24 = vpop.f32.mrf.mxu3 }
 0x420   : > { %1035 = vmax.xlane.f32.xlu1 %v2976_v24 }
 0x427   : > { %v2979_v25 = vpop.f32.mrf.mxu3 }
 0x428   : > { %1037 = vmax.xlane.f32.xlu2 %v2979_v25 }
 0x42f   : > { %v2982_v26 = vpop.f32.mrf.mxu3 }
 0x430   : > { %1039 = vmax.xlane.f32.xlu1 %v2982_v26 }
 0x435   : > { %v1014_v29 = vpop.xlane.xlu1 %1013 }
 0x436   : > { %v2988_v30 = vmax.f32 %v2985_v28, %v1014_v29  ;;  %v3086_v29 = vld [vmem:[#allocation5 + $0x58] sm:$0xff] }
 0x437   : > { %v2990_v31 = vpop.f32.mrf.mxu3 }
 0x438   : > { %v1061_v32 = vsub.f32 %v2985_v28, %v2988_v30  ;;  %1547 = vst.msk [vmem:[#allocation5] sm:$0xff] %vm1317_vm4, %v2988_v30  ;;  %1041 = vmax.xlane.f32.xlu2 %v2990_v31 }
 0x43d   : > { %v1016_v34 = vpop.xlane.xlu1 %1015 }
 0x43e   : > { %v3000_v35 = vmax.f32 %v2997_v33, %v1016_v34 }
 0x43f   : > { %v3002_v36 = vpop.f32.mrf.mxu3 }
 0x440   : > { %v1062_v37 = vsub.f32 %v2997_v33, %v3000_v35  ;;  %1548 = vst.msk [vmem:[#allocation5 + $0x8] sm:$0xff] %vm1317_vm4, %v3000_v35  ;;  %1043 = vmax.xlane.f32.xlu1 %v3002_v36  ;;  %v1077_v33 = vmul.f32 1.442695, %v1061_v32 }
 0x445   : > { %v1018_v39 = vpop.xlane.xlu2 %1017 }
 0x446   : > { %v1047_v40 = vmax.f32 %v999_v38, %v1018_v39  ;;  %v1009_v39 = vld [vmem:[#allocation5 + $0x60] sm:$0xff] }
 0x448   : > { %v1063_v41 = vsub.f32 %v999_v38, %v1047_v40  ;;  %1549 = vst.msk [vmem:[#allocation5 + $0x10] sm:$0xff] %vm1317_vm4, %v1047_v40 }
 0x44a   : > { %v1081_v42 = vmul.f32 1.442695, %v1063_v41 }
 0x44c   : > { %2344 = vpow2.f32 %v1081_v42 }
 0x44d   : > { %v1020_v44 = vpop.xlane.xlu2 %1019 }
 0x44e   : > { %v3013_v45 = vmax.f32 %v3010_v43, %v1020_v44 }
 0x450   : > { %v1064_v46 = vsub.f32 %v3010_v43, %v3013_v45  ;;  %1550 = vst.msk [vmem:[#allocation5 + $0x18] sm:$0xff] %vm1317_vm4, %v3013_v45  ;;  %1111 = vperm.xlu2 %2341, %v2988_v30  }
 0x452   : > { %v3020_v47 = vpop.eup %2344  ;;  %v1083_v28 = vmul.f32 1.442695, %v1064_v46 }
 0x453   : > { %1362 = vperm.xlu0 %2343, %v3020_v47  }
 0x455   : > { %v1022_v49 = vpop.xlane.xlu1 %1021 }
 0x456   : > { %v3026_v50 = vmax.f32 %v3023_v48, %v1022_v49  ;;  %v3097_v49 = vld [vmem:[#allocation5 + $0x68] sm:$0xff] }
 0x458   : > { %v1065_v51 = vsub.f32 %v3023_v48, %v3026_v50  ;;  %1551 = vst.msk [vmem:[#allocation5 + $0x20] sm:$0xff] %vm1317_vm4, %v3026_v50  ;;  %1121 = vperm.xlu2 %2341, %v1047_v40  }
 0x459   : > { %1116 = vperm.xlu1 %2342, %v3000_v35  }
 0x45a   : > { %v1085_v35 = vmul.f32 1.442695, %v1065_v51 }
 0x45d   : > { %v1024_v53 = vpop.xlane.xlu2 %1023 }
 0x45e   : > { %v3036_v54 = vmax.f32 %v3033_v52, %v1024_v53 }
 0x460   : > { %v1066_v55 = vsub.f32 %v3033_v52, %v3036_v54  ;;  %1552 = vst.msk [vmem:[#allocation5 + $0x28] sm:$0xff] %vm1317_vm4, %v3036_v54 }
 0x462   : > { %v1087_v43 = vmul.f32 1.442695, %v1066_v55 }
 0x465   : > { %v1026_v57 = vpop.xlane.xlu0 %1025 }
 0x466   : > { %v3045_v58 = vmax.f32 %v3042_v56, %v1026_v57 }
 0x468   : > { %v1067_v59 = vsub.f32 %v3042_v56, %v3045_v58  ;;  %1553 = vst.msk [vmem:[#allocation5 + $0x30] sm:$0xff] %vm1317_vm4, %v3045_v58 }
 0x46a   : > { %v1089_v30 = vmul.f32 1.442695, %v1067_v59 }
 0x46d   : > { %v1028_v61 = vpop.xlane.xlu1 %1027 }
 0x46e   : > { %v3054_v62 = vmax.f32 %v3051_v60, %v1028_v61 }
 0x470   : > { %v1068_v63 = vsub.f32 %v3051_v60, %v3054_v62  ;;  %1554 = vst.msk [vmem:[#allocation5 + $0x38] sm:$0xff] %vm1317_vm4, %v3054_v62 }
 0x475   : > { %v1030_v1 = vpop.xlane.xlu2 %1029 }
 0x476   : > { %v3063_v2 = vmax.f32 %v3060_v0, %v1030_v1  ;;  %v2126_v1 = vld [vmem:[%s878_s15 + $0x8] sm:$0xff] }
 0x477   : > { %1472 = vmatpush.bf16.xpose.msra.mxu1 %v2126_v1  ;;  %2188 = vmatpush.bf16.xpose.msra.mxu2 %v2126_v1 }
 0x478   : > { %v1069_v3 = vsub.f32 %v3060_v0, %v3063_v2  ;;  %1555 = vst.msk [vmem:[#allocation5 + $0x40] sm:$0xff] %vm1317_vm4, %v3063_v2  ;;  %1151 = vperm.xlu2 %2341, %v3063_v2  }
 0x47d   : > { %v1032_v5 = vpop.xlane.xlu1 %1031 }
 0x47e   : > { %v1054_v6 = vmax.f32 %v1006_v4, %v1032_v5  ;;  %v3112_v5 = vld [vmem:[#allocation5 + $0x70] sm:$0xff] }
 0x480   : > { %v1070_v7 = vsub.f32 %v1006_v4, %v1054_v6  ;;  %1556 = vst.msk [vmem:[#allocation5 + $0x48] sm:$0xff] %vm1317_vm4, %v1054_v6  ;;  %1126 = vperm.xlu2 %2341, %v3013_v45   ;;  %1156 = vperm.xlu1 %2342, %v1054_v6   ;;  %v1079_v6 = vmul.f32 1.442695, %v1062_v37  ;;  %v1093_v45 = vmul.f32 1.442695, %v1069_v3 }
 0x482   : > { %v1095_v8 = vmul.f32 1.442695, %v1070_v7 }
 0x484   : > { %2346 = vpow2.f32 %v1095_v8 }
 0x488   : > { %1131 = vperm.xlu1 %2342, %v3026_v50  }
 0x48a   : > { %v3075_v10 = vpop.eup %2346 }
 0x48b   : > { %1397 = vperm.xlu0 %2343, %v3075_v10   ;;  %v1034_v11 = vpop.xlane.xlu2 %1033 }
 0x48c   : > { %v3079_v12 = vmax.f32 %v3073_v9, %v1034_v11 }
 0x48e   : > { %v1071_v27 = vsub.f32 %v3073_v9, %v3079_v12  ;;  %1557 = vst.msk [vmem:[#allocation5 + $0x50] sm:$0xff] %vm1317_vm4, %v3079_v12 }
 0x490   : > { %1161 = vperm.xlu1 %2342, %v3079_v12  }
 0x493   : > { %v1036_v34 = vpop.xlane.xlu1 %1035 }
 0x494   : > { %v3089_v38 = vmax.f32 %v3086_v29, %v1036_v34  ;;  %v2125_v34 = vld [vmem:[%s878_s15] sm:$0xff] }
 0x495   : > { %1473 = vmatpush.bf16.xpose.msra.mxu1 %v2125_v34  ;;  %2189 = vmatpush.bf16.xpose.msra.mxu2 %v2125_v34 }
 0x496   : > { %1558 = vst.msk [vmem:[#allocation5 + $0x58] sm:$0xff] %vm1317_vm4, %v3089_v38  ;;  %1166 = vperm.xlu2 %2341, %v3089_v38   ;;  %v1072_v56 = vsub.f32 %v3086_v29, %v3089_v38 }
 0x498   : > { %1141 = vperm.xlu1 %2342, %v3045_v58   ;;  %v1099_v55 = vmul.f32 1.442695, %v1072_v56 }
 0x49b   : > { %v1038_v40 = vpop.xlane.xlu2 %1037 }
 0x49c   : > { %v1057_v41 = vmax.f32 %v1009_v39, %v1038_v40 }
 0x49e   : > { %v1073_v42 = vsub.f32 %v1009_v39, %v1057_v41  ;;  %1559 = vst.msk [vmem:[#allocation5 + $0x60] sm:$0xff] %vm1317_vm4, %v1057_v41  ;;  %1136 = vperm.xlu2 %2341, %v3036_v54   ;;  %v3126_v39 = vld [vmem:[#allocation5 + $0x78] sm:$0xff]  ;;  %v1091_v54 = vmul.f32 1.442695, %v1068_v63 }
 0x4a0   : > { %v1101_v44 = vmul.f32 1.442695, %v1073_v42 }
 0x4a2   : > { %2348 = vpow2.f32 %v1101_v44 }
 0x4a3   : > { %v1040_v53 = vpop.xlane.xlu1 %1039  ;;  %2350 = vpow2.f32 %v1079_v6 }
 0x4a4   : > { %v3100_v57 = vmax.f32 %v3097_v49, %v1040_v53  ;;  %2352 = vpow2.f32 %v1077_v33 }
 0x4a5   : > { %2354 = vpow2.f32 %v1085_v35 }
 0x4a6   : > { %v1074_v61 = vsub.f32 %v3097_v49, %v3100_v57  ;;  %1560 = vst.msk [vmem:[#allocation5 + $0x68] sm:$0xff] %vm1317_vm4, %v3100_v57  ;;  %1171 = vperm.xlu2 %2341, %v1057_v41   ;;  %1176 = vperm.xlu1 %2342, %v3100_v57   ;;  %2356 = vpow2.f32 %v1083_v28 }
 0x4a7   : > { %2358 = vpow2.f32 %v1089_v30 }
 0x4a8   : > { %v3109_v4 = vpop.eup %2348  ;;  %2360 = vpow2.f32 %v1087_v43 }
 0x4a9   : > { %1412 = vperm.xlu0 %2343, %v3109_v4   ;;  %v3137_v41 = vpop.eup %2350  ;;  %2362 = vpow2.f32 %v1093_v45 }
 0x4aa   : > { %v3151_v32 = vpop.eup %2352  ;;  %2364 = vpow2.f32 %v1091_v54 }
 0x4ab   : > { %v1042_v7 = vpop.xlane.xlu2 %1041  ;;  %v3153_v48 = vpop.eup %2354  ;;  %2366 = vpow2.f32 %v1099_v55 }
 0x4ac   : > { %v3118_v8 = vmax.f32 %v3112_v5, %v1042_v7  ;;  %v3163_v46 = vpop.eup %2356 }
 0x4ad   : > { %v3165_v51 = vpop.eup %2358 }
 0x4ae   : > { %v1075_v11 = vsub.f32 %v3112_v5, %v3118_v8  ;;  %1561 = vst.msk [vmem:[#allocation5 + $0x70] sm:$0xff] %vm1317_vm4, %v3118_v8  ;;  %1146 = vperm.xlu2 %2341, %v3054_v62   ;;  %1181 = vperm.xlu1 %2342, %v3118_v8   ;;  %v3175_v2 = vpop.eup %2360  ;;  %v1097_v62 = vmul.f32 1.442695, %v1071_v27  ;;  %v1335_v8 = vld [vmem:[#allocation7 + $0x8] sm:$0xff] }
 0x4af   : > { %v3178_v29 = vpop.eup %2362 }
 0x4b0   : > { %v3182_v60 = vpop.eup %2364 }
 0x4b1   : > { %v3187_v63 = vpop.eup %2366 }
 0x4b3   : > { %v1044_v37 = vpop.xlane.xlu1 %1043  ;;  %v1112_v50 = vpop.permute.xlu2 %1111 }
 0x4b4   : > { %v3135_v40 = vmax.f32 %v3126_v39, %v1044_v37  ;;  %v1189_v52 = vsub.f32 %v2943_v13, %v1112_v50 }
 0x4b6   : > { %v1076_v42 = vsub.f32 %v3126_v39, %v3135_v40  ;;  %1562 = vst.msk [vmem:[#allocation5 + $0x78] sm:$0xff] %vm1317_vm4, %v3135_v40  ;;  %1186 = vperm.xlu2 %2341, %v3135_v40   ;;  %1357 = vperm.xlu1 %2342, %v3137_v41   ;;  %v1205_v59 = vmul.f32 1.442695, %v1189_v52  ;;  %v1103_v40 = vmul.f32 1.442695, %v1074_v61 }
 0x4b8   : > { %2368 = vpow2.f32 %v1205_v59 }
 0x4bb   : > { %v1122_v58 = vpop.permute.xlu2 %1121 }
 0x4bc   : > { %v1191_v53 = vsub.f32 %v2949_v15, %v1122_v58 }
 0x4be   : > { %1352 = vperm.xlu2 %2341, %v3151_v32   ;;  %1372 = vperm.xlu1 %2342, %v3153_v48   ;;  %v1209_v6 = vmul.f32 1.442695, %v1191_v53 }
 0x4c6   : > { %1367 = vperm.xlu2 %2341, %v3163_v46   ;;  %1382 = vperm.xlu1 %2342, %v3165_v51  }
 0x4cb   : > { %v1117_v0 = vpop.permute.xlu1 %1116 }
 0x4cc   : > { %v1190_v3 = vsub.f32 %v2946_v14, %v1117_v0  ;;  %v2369_v14 = vpop.eup %2368 }
 0x4ce   : > { %v1207_v38 = vmul.f32 1.442695, %v1190_v3  ;;  %1377 = vperm.xlu2 %2341, %v3175_v2   ;;  %1392 = vperm.xlu1 %2342, %v3178_v29  }
 0x4d0   : > { %2370 = vpow2.f32 %v1207_v38 }
 0x4d1   : > { %2372 = vpow2.f32 %v1097_v62 }
 0x4d2   : > { %v1152_v13 = vpop.permute.xlu2 %1151  ;;  %2374 = vpow2.f32 %v1209_v6 }
 0x4d3   : > { %v1197_v35 = vsub.f32 %v2967_v21, %v1152_v13 }
 0x4d5   : > { %v1221_v28 = vmul.f32 1.442695, %v1197_v35 }
 0x4d6   : > { %v2371_v44 = vpop.eup %2370  ;;  %1387 = vperm.xlu2 %2341, %v3182_v60   ;;  %1407 = vperm.xlu1 %2342, %v3187_v63  }
 0x4d7   : > { %v1446_v1 = vpack.c.bf16 %v2371_v44, %v2369_v14  ;;  %v3193_v33 = vpop.eup %2372 }
 0x4d8   : > { %v2375_v12 = vpop.eup %2374 }
 0x4d9   : > { %1474 = vmatmul.bf16.vlgmr.msra.gmra.mxu1 %v1446_v1 }
 0x4da   : > { %v1127_v7 = vpop.permute.xlu2 %1126 }
 0x4db   : > { %v1192_v34 = vsub.f32 %v2952_v16, %v1127_v7 }
 0x4dd   : > { %v1211_v9 = vmul.f32 1.442695, %v1192_v34 }
 0x4de   : > { %1402 = vperm.xlu2 %2341, %v3193_v33  }
 0x4df   : > { %2376 = vpow2.f32 %v1211_v9 }
 0x4e0   : > { %2378 = vpow2.f32 %v1221_v28 }
 0x4e5   : > { %v2377_v15 = vpop.eup %2376 }
 0x4e6   : > { %v1447_v27 = vpack.c.bf16 %v2377_v15, %v2375_v12  ;;  %v2379_v55 = vpop.eup %2378 }
 0x4e9   : > { %1479 = vmatmul.bf16.gmra.mxu1 %v1447_v27 }
 0x4f0   : > { %v1167_v37 = vpop.permute.xlu2 %1166 }
 0x4f1   : > { %v1200_v21 = vsub.f32 %v2976_v24, %v1167_v37 }
 0x4f2   : > { %v1157_v30 = vpop.permute.xlu1 %1156 }
 0x4f3   : > { %v1198_v50 = vsub.f32 %v2970_v22, %v1157_v30  ;;  %v1227_v3 = vmul.f32 1.442695, %v1200_v21 }
 0x4f5   : > { %v1223_v43 = vmul.f32 1.442695, %v1198_v50 }
 0x4f7   : > { %2380 = vpow2.f32 %v1223_v43 }
 0x4f8   : > { %v1137_v16 = vpop.permute.xlu2 %1136 }
 0x4f9   : > { %v1194_v45 = vsub.f32 %v2958_v18, %v1137_v16 }
 0x4fa   : > { %v1132_v56 = vpop.permute.xlu1 %1131 }
 0x4fb   : > { %v1215_v52 = vmul.f32 1.442695, %v1194_v45  ;;  %v1193_v54 = vsub.f32 %v2955_v17, %v1132_v56 }
 0x4fd   : > { %v3200_v58 = vpop.eup %2380  ;;  %v1213_v59 = vmul.f32 1.442695, %v1193_v54  ;;  %2382 = vpow2.f32 %v1215_v52  ;;  %v1107_v54 = vmul.f32 1.442695, %v1076_v42  ;;  %v1105_v42 = vmul.f32 1.442695, %v1075_v11 }
 0x4fe   : > { %v1450_v0 = vpack.c.bf16 %v3200_v58, %v2379_v55 }
 0x4ff   : > { %2384 = vpow2.f32 %v1213_v59 }
 0x500   : > { %v1172_v22 = vpop.permute.xlu2 %1171  ;;  %1494 = vmatmul.bf16.vlgmr.msra.gmra.mxu2 %v1450_v0  ;;  %1269 = vadd.xlane.f32.xlu1 %v2369_v14  ;;  %2386 = vpow2.f32 %v1227_v3  ;;  %v1334_v3 = vld [vmem:[#allocation7] sm:$0xff] }
 0x502   : > { %v1162_v38 = vpop.permute.xlu1 %1161 }
 0x503   : > { %v1199_v18 = vsub.f32 %v2973_v23, %v1162_v38  ;;  %v2383_v13 = vpop.eup %2382 }
 0x505   : > { %v2385_v62 = vpop.eup %2384  ;;  %v1225_v17 = vmul.f32 1.442695, %v1199_v18 }
 0x506   : > { %v1448_v53 = vpack.c.bf16 %v2383_v13, %v2385_v62  ;;  %v2387_v34 = vpop.eup %2386 }
 0x507   : > { %2388 = vpow2.f32 %v1225_v17  ;;  %1271 = vadd.xlane.f32.xlu2 %v2371_v44 }
 0x508   : > { %v1147_v1 = vpop.permute.xlu2 %1146  ;;  %1484 = vmatmul.bf16.gmra.mxu1 %v1448_v53  ;;  %1273 = vadd.xlane.f32.xlu1 %v2375_v12  ;;  %v1336_v53 = vld [vmem:[#allocation7 + $0x10] sm:$0xff] }
 0x509   : > { %v1196_v24 = vsub.f32 %v2964_v20, %v1147_v1  ;;  %v1201_v20 = vsub.f32 %v2979_v25, %v1172_v22  ;;  %v1363_v1 = vpop.permute.xlu0 %1362 }
 0x50a   : > { %v1142_v6 = vpop.permute.xlu1 %1141 }
 0x50b   : > { %v1219_v7 = vmul.f32 1.442695, %v1196_v24  ;;  %v1195_v14 = vsub.f32 %v2961_v19, %v1142_v6  ;;  %v1229_v19 = vmul.f32 1.442695, %v1201_v20  ;;  %v1432_v24 = vmul.f32 %v1363_v1, %v1336_v53 }
 0x50d   : > { %v2389_v9 = vpop.eup %2388  ;;  %v1217_v27 = vmul.f32 1.442695, %v1195_v14  ;;  %2390 = vpow2.f32 %v1219_v7 }
 0x50e   : > { %v1451_v23 = vpack.c.bf16 %v2387_v34, %v2389_v9 }
 0x50f   : > { %2392 = vpow2.f32 %v1217_v27  ;;  %1275 = vadd.xlane.f32.xlu2 %v2377_v15 }
 0x510   : > { %v1187_v35 = vpop.permute.xlu2 %1186  ;;  %1499 = vmatmul.bf16.gmra.mxu2 %v1451_v23  ;;  %1277 = vadd.xlane.f32.xlu1 %v2385_v62 }
 0x511   : > { %v1204_v44 = vsub.f32 %v3002_v36, %v1187_v35 }
 0x513   : > { %v1235_v37 = vmul.f32 1.442695, %v1204_v44  ;;  %v2391_v12 = vpop.eup %2390  ;;  %v1237_v44 = vld [vmem:[#allocation6] sm:$0xff] }
 0x515   : > { %v2393_v28 = vpop.eup %2392  ;;  %2394 = vpow2.f32 %v1235_v37 }
 0x516   : > { %v1449_v30 = vpack.c.bf16 %v2391_v12, %v2393_v28  ;;  %2396 = vpow2.f32 %v1229_v19  ;;  %v1239_v19 = vld [vmem:[#allocation6 + $0x10] sm:$0xff] }
 0x517   : > { %1279 = vadd.xlane.f32.xlu2 %v2383_v13 }
 0x518   : > { %1489 = vmatmul.bf16.gmra.mxu1 %v1449_v30  ;;  %v1177_v50 = vpop.permute.xlu1 %1176  ;;  %1281 = vadd.xlane.f32.xlu1 %v2393_v28  ;;  %v1238_v30 = vld [vmem:[#allocation6 + $0x8] sm:$0xff] }
 0x519   : > { %v1202_v43 = vsub.f32 %v2982_v26, %v1177_v50  ;;  %v1254_v50 = vmul.f32 %v3137_v41, %v1238_v30 }
 0x51b   : > { %v2395_v15 = vpop.eup %2394  ;;  %v1231_v16 = vmul.f32 1.442695, %v1202_v43 }
 0x51c   : > { %1299 = vadd.xlane.f32.xlu0 %v2395_v15  ;;  %v2397_v45 = vpop.eup %2396 }
 0x51d   : > { %2398 = vpow2.f32 %v1231_v16 }
 0x51e   : > { %2400 = vpow2.f32 %v1107_v54  ;;  %v1338_v54 = vld [vmem:[#allocation7 + $0x20] sm:$0xff] }
 0x51f   : > { %1283 = vadd.xlane.f32.xlu2 %v2391_v12  ;;  %v1253_v12 = vmul.f32 %v3151_v32, %v1237_v44  ;;  %v1398_v32 = vpop.permute.xlu0 %1397  ;;  %v1344_v44 = vld [vmem:[#allocation7 + $0x50] sm:$0xff] }
 0x520   : > { %v1182_v36 = vpop.permute.xlu1 %1181  ;;  %1285 = vadd.xlane.f32.xlu1 %v2379_v55 }
 0x521   : > { %v1203_v56 = vsub.f32 %v2990_v31, %v1182_v36 }
 0x523   : > { %v2399_v25 = vpop.eup %2398  ;;  %v1233_v59 = vmul.f32 1.442695, %v1203_v56  ;;  %v1342_v56 = vld [vmem:[#allocation7 + $0x40] sm:$0xff] }
 0x524   : > { %v1452_v52 = vpack.c.bf16 %v2399_v25, %v2397_v45  ;;  %v3215_v26 = vpop.eup %2400 }
 0x525   : > { %2402 = vpow2.f32 %v1233_v59 }
 0x526   : > { %1504 = vmatmul.bf16.gmra.mxu2 %v1452_v52  ;;  %2404 = vpow2.f32 %v1103_v40  ;;  %v1241_v52 = vld [vmem:[#allocation6 + $0x20] sm:$0xff] }
 0x527   : > { %1287 = vadd.xlane.f32.xlu2 %v3200_v58  ;;  %2406 = vpow2.f32 %v1105_v42  ;;  %v1353_v58 = vpop.permute.xlu2 %1352  ;;  %v1257_v41 = vmul.f32 %v3153_v48, %v1241_v52  ;;  %v1339_v48 = vld [vmem:[#allocation7 + $0x28] sm:$0xff] }
 0x528   : > { %1289 = vadd.xlane.f32.xlu1 %v2389_v9  ;;  %v1358_v39 = vpop.permute.xlu1 %1357  ;;  %v1430_v49 = vmul.f32 %v1353_v58, %v1334_v3 }
 0x529   : > { %v1431_v11 = vmul.f32 %v1358_v39, %v1335_v8  ;;  %v3254_v8 = vpop.permute.xlu0 %1412 }
 0x52b   : > { %v2403_v55 = vpop.eup %2402 }
 0x52c   : > { %v1453_v31 = vpack.c.bf16 %v2395_v15, %v2403_v55  ;;  %v3224_v0 = vpop.eup %2404  ;;  %v1255_v15 = vmul.f32 %v3020_v47, %v1239_v19 }
 0x52d   : > { %v3227_v22 = vpop.eup %2406 }
 0x52f   : > { %1291 = vadd.xlane.f32.xlu2 %v2387_v34  ;;  %v1368_v38 = vpop.permute.xlu2 %1367  ;;  %v1337_v34 = vld [vmem:[#allocation7 + $0x18] sm:$0xff] }
 0x530   : > { %1427 = vperm.xlu0 %2343, %v3215_v26   ;;  %1293 = vadd.xlane.f32.xlu1 %v2397_v45  ;;  %v1373_v21 = vpop.permute.xlu1 %1372  ;;  %v1433_v27 = vmul.f32 %v1368_v38, %v1337_v34 }
 0x531   : > { %v1434_v42 = vmul.f32 %v1373_v21, %v1338_v54 }
 0x536   : > { %1509 = vmatmul.bf16.gmra.mxu2 %v1453_v31 }
 0x537   : > { %1295 = vadd.xlane.f32.xlu2 %v2399_v25  ;;  %v3233_v18 = vpop.permute.xlu2 %1377  ;;  %v1240_v25 = vld [vmem:[#allocation6 + $0x18] sm:$0xff] }
 0x538   : > { %1297 = vadd.xlane.f32.xlu1 %v2403_v55  ;;  %v3230_v61 = vpop.permute.xlu1 %1382  ;;  %v1256_v59 = vmul.f32 %v3163_v46, %v1240_v25  ;;  %v1243_v46 = vld [vmem:[#allocation6 + $0x30] sm:$0xff] }
 0x53f   : > { %v3236_v14 = vpop.permute.xlu2 %1387 }
 0x540   : > { %v1393_v17 = vpop.permute.xlu1 %1392 }
 0x541   : > { %v1438_v55 = vmul.f32 %v1393_v17, %v1342_v56  ;;  %v1247_v56 = vld [vmem:[#allocation6 + $0x50] sm:$0xff] }
 0x547   : > { %v3242_v37 = vpop.permute.xlu2 %1402 }
 0x548   : > { %v3239_v9 = vpop.permute.xlu1 %1407  ;;  %v1440_v30 = vmul.f32 %v3242_v37, %v1344_v44  ;;  %v1345_v37 = vld [vmem:[#allocation7 + $0x58] sm:$0xff] }
 0x54f   : > { %1417 = vperm.xlu2 %2341, %v3224_v0  }
 0x551   : > { %1422 = vperm.xlu1 %2342, %v3227_v22  }
 0x556   : > { %v1475_v57 = vpop.f32.mrf.mxu1 }
 0x557   : > { %v1515_v5 = vadd.f32 %v1475_v57, %v1430_v49  ;;  %v1242_v57 = vld [vmem:[#allocation6 + $0x28] sm:$0xff] }
 0x558   : > { %v1258_v21 = vmul.f32 %v3175_v2, %v1242_v57 }
 0x559   : > { %1531 = vst.msk [vmem:[#allocation7] sm:$0xff] %vm923_vm3, %v1515_v5  ;;  %v1343_v5 = vld [vmem:[#allocation7 + $0x48] sm:$0xff] }
 0x55e   : > { %v1477_v13 = vpop.f32.mrf.mxu1 }
 0x55f   : > { %v1516_v62 = vadd.f32 %v1477_v13, %v1431_v11  ;;  %v1439_v11 = vmul.f32 %v1398_v32, %v1343_v5  ;;  %v1246_v32 = vld [vmem:[#allocation6 + $0x48] sm:$0xff]  ;;  %v1346_v5 = vld [vmem:[#allocation7 + $0x60] sm:$0xff] }
 0x560   : > { %v1262_v52 = vmul.f32 %v3075_v10, %v1246_v32  ;;  %v1249_v10 = vld [vmem:[#allocation6 + $0x60] sm:$0xff] }
 0x561   : > { %1532 = vst.msk [vmem:[#allocation7 + $0x8] sm:$0xff] %vm923_vm3, %v1516_v62  ;;  %v1259_v62 = vmul.f32 %v3165_v51, %v1243_v46  ;;  %v1250_v46 = vld [vmem:[#allocation6 + $0x68] sm:$0xff] }
 0x566   : > { %v1480_v6 = vpop.f32.mrf.mxu1 }
 0x567   : > { %v1517_v7 = vadd.f32 %v1480_v6, %v1432_v24  ;;  %v1252_v24 = vld [vmem:[#allocation6 + $0x78] sm:$0xff]  ;;  %v1435_v6 = vmul.f32 %v3233_v18, %v1339_v48  ;;  %v1340_v18 = vld [vmem:[#allocation7 + $0x30] sm:$0xff] }
 0x568   : > { %v1268_v2 = vmul.f32 %v3215_v26, %v1252_v24  ;;  %v1251_v48 = vld [vmem:[#allocation6 + $0x70] sm:$0xff]  ;;  %v1347_v24 = vld [vmem:[#allocation7 + $0x68] sm:$0xff] }
 0x569   : > { %1533 = vst.msk [vmem:[#allocation7 + $0x10] sm:$0xff] %vm923_vm3, %v1517_v7 }
 0x56e   : > { %v1482_v23 = vpop.f32.mrf.mxu1 }
 0x56f   : > { %v1518_v35 = vadd.f32 %v1482_v23, %v1433_v27 }
 0x571   : > { %1534 = vst.msk [vmem:[#allocation7 + $0x18] sm:$0xff] %vm923_vm3, %v1518_v35  ;;  %v1244_v35 = vld [vmem:[#allocation6 + $0x38] sm:$0xff] }
 0x573   : > { %v1270_v20 = vpop.xlane.xlu1 %1269 }
 0x574   : > { %v1301_v28 = vadd.f32 %v1270_v20, %v1253_v12  ;;  %v1245_v12 = vld [vmem:[#allocation6 + $0x40] sm:$0xff] }
 0x576   : > { %1318 = vst.msk [vmem:[#allocation6] sm:$0xff] %vm1317_vm4, %v1301_v28  ;;  %v1260_v28 = vmul.f32 %v3182_v60, %v1244_v35  ;;  %v1348_v35 = vld [vmem:[#allocation7 + $0x70] sm:$0xff] }
 0x57a   : > { %v1272_v43 = vpop.xlane.xlu2 %1271 }
 0x57b   : > { %v1302_v16 = vadd.f32 %v1272_v43, %v1254_v50  ;;  %v1274_v36 = vpop.xlane.xlu1 %1273  ;;  %v1261_v50 = vmul.f32 %v3178_v29, %v1245_v12  ;;  %v1341_v29 = vld [vmem:[#allocation7 + $0x38] sm:$0xff] }
 0x57c   : > { %v1303_v45 = vadd.f32 %v1274_v36, %v1255_v15 }
 0x57d   : > { %1319 = vst.msk [vmem:[#allocation6 + $0x8] sm:$0xff] %vm1317_vm4, %v1302_v16  ;;  %v1436_v16 = vmul.f32 %v3230_v61, %v1340_v18  ;;  %v1441_v61 = vmul.f32 %v3239_v9, %v1345_v37 }
 0x57e   : > { %1320 = vst.msk [vmem:[#allocation6 + $0x10] sm:$0xff] %vm1317_vm4, %v1303_v45 }
 0x582   : > { %v1276_v31 = vpop.xlane.xlu2 %1275 }
 0x583   : > { %v1304_v39 = vadd.f32 %v1276_v31, %v1256_v59  ;;  %v1495_v47 = vpop.f32.mrf.mxu2  ;;  %v1278_v40 = vpop.xlane.xlu1 %1277  ;;  %v1263_v59 = vmul.f32 %v3193_v33, %v1247_v56 }
 0x584   : > { %v1523_v58 = vadd.f32 %v1495_v47, %v1438_v55  ;;  %v1305_v3 = vadd.f32 %v1278_v40, %v1257_v41 }
 0x585   : > { %1321 = vst.msk [vmem:[#allocation6 + $0x18] sm:$0xff] %vm1317_vm4, %v1304_v39  ;;  %v1485_v38 = vpop.f32.mrf.mxu1  ;;  %v1437_v39 = vmul.f32 %v3236_v14, %v1341_v29 }
 0x586   : > { %1539 = vst.msk [vmem:[#allocation7 + $0x40] sm:$0xff] %vm923_vm3, %v1523_v58  ;;  %v1519_v49 = vadd.f32 %v1485_v38, %v1434_v42  ;;  %v1265_v38 = vmul.f32 %v3109_v4, %v1249_v10 }
 0x587   : > { %1322 = vst.msk [vmem:[#allocation6 + $0x20] sm:$0xff] %vm1317_vm4, %v1305_v3  ;;  %v1248_v3 = vld [vmem:[#allocation6 + $0x58] sm:$0xff] }
 0x588   : > { %1535 = vst.msk [vmem:[#allocation7 + $0x20] sm:$0xff] %vm923_vm3, %v1519_v49  ;;  %v1264_v33 = vmul.f32 %v3187_v63, %v1248_v3 }
 0x58a   : > { %v1280_v13 = vpop.xlane.xlu2 %1279 }
 0x58b   : > { %v1306_v17 = vadd.f32 %v1280_v13, %v1258_v21  ;;  %v1497_v53 = vpop.f32.mrf.mxu2  ;;  %v1282_v1 = vpop.xlane.xlu1 %1281  ;;  %v1442_v21 = vmul.f32 %v3254_v8, %v1346_v5  ;;  %v1266_v13 = vmul.f32 %v3224_v0, %v1250_v46 }
 0x58c   : > { %v1524_v7 = vadd.f32 %v1497_v53, %v1439_v11  ;;  %v1307_v34 = vadd.f32 %v1282_v1, %v1259_v62 }
 0x58d   : > { %1323 = vst.msk [vmem:[#allocation6 + $0x28] sm:$0xff] %vm1317_vm4, %v1306_v17  ;;  %v1487_v27 = vpop.f32.mrf.mxu1  ;;  %v1267_v17 = vmul.f32 %v3227_v22, %v1251_v48 }
 0x58e   : > { %1540 = vst.msk [vmem:[#allocation7 + $0x48] sm:$0xff] %vm923_vm3, %v1524_v7  ;;  %v1520_v23 = vadd.f32 %v1487_v27, %v1435_v6  ;;  %v1349_v27 = vld [vmem:[#allocation7 + $0x78] sm:$0xff] }
 0x58f   : > { %1324 = vst.msk [vmem:[#allocation6 + $0x30] sm:$0xff] %vm1317_vm4, %v1307_v34  ;;  %v1300_v51 = vpop.xlane.xlu0 %1299 }
 0x590   : > { %1536 = vst.msk [vmem:[#allocation7 + $0x28] sm:$0xff] %vm923_vm3, %v1520_v23  ;;  %v1316_v20 = vadd.f32 %v1300_v51, %v1268_v2 }
 0x592   : > { %1333 = vst.msk [vmem:[#allocation6 + $0x78] sm:$0xff] %vm1317_vm4, %v1316_v20  ;;  %v1284_v19 = vpop.xlane.xlu2 %1283 }
 0x593   : > { %v1308_v26 = vadd.f32 %v1284_v19, %v1260_v28  ;;  %v1500_v43 = vpop.f32.mrf.mxu2  ;;  %v1286_v15 = vpop.xlane.xlu1 %1285 }
 0x594   : > { %v1525_v36 = vadd.f32 %v1500_v43, %v1440_v30  ;;  %v1309_v45 = vadd.f32 %v1286_v15, %v1261_v50 }
 0x595   : > { %1325 = vst.msk [vmem:[#allocation6 + $0x38] sm:$0xff] %vm1317_vm4, %v1308_v26  ;;  %v1490_v25 = vpop.f32.mrf.mxu1 }
 0x596   : > { %1541 = vst.msk [vmem:[#allocation7 + $0x50] sm:$0xff] %vm923_vm3, %v1525_v36  ;;  %v1521_v60 = vadd.f32 %v1490_v25, %v1436_v16 }
 0x597   : > { %1326 = vst.msk [vmem:[#allocation6 + $0x40] sm:$0xff] %vm1317_vm4, %v1309_v45 }
 0x598   : > { %1537 = vst.msk [vmem:[#allocation7 + $0x30] sm:$0xff] %vm923_vm3, %v1521_v60 }
 0x59a   : > { %v1288_v54 = vpop.xlane.xlu2 %1287 }
 0x59b   : > { %v1310_v55 = vadd.f32 %v1288_v54, %v1262_v52  ;;  %v1502_v31 = vpop.f32.mrf.mxu2  ;;  %v1290_v41 = vpop.xlane.xlu1 %1289 }
 0x59c   : > { %v1526_v47 = vadd.f32 %v1502_v31, %v1441_v61  ;;  %v1311_v40 = vadd.f32 %v1290_v41, %v1263_v59 }
 0x59d   : > { %1327 = vst.msk [vmem:[#allocation6 + $0x48] sm:$0xff] %vm1317_vm4, %v1310_v55  ;;  %v1492_v42 = vpop.f32.mrf.mxu1 }
 0x59e   : > { %1542 = vst.msk [vmem:[#allocation7 + $0x58] sm:$0xff] %vm923_vm3, %v1526_v47  ;;  %v1522_v58 = vadd.f32 %v1492_v42, %v1437_v39 }
 0x59f   : > { %1328 = vst.msk [vmem:[#allocation6 + $0x50] sm:$0xff] %vm1317_vm4, %v1311_v40 }
 0x5a0   : > { %1538 = vst.msk [vmem:[#allocation7 + $0x38] sm:$0xff] %vm923_vm3, %v1522_v58 }
 0x5a2   : > { %v1292_v9 = vpop.xlane.xlu2 %1291  ;;  %v1428_v23 = vpop.permute.xlu0 %1427 }
 0x5a3   : > { %v1312_v14 = vadd.f32 %v1292_v9, %v1264_v33  ;;  %v1294_v49 = vpop.xlane.xlu1 %1293  ;;  %v1445_v22 = vmul.f32 %v1428_v23, %v1349_v27 }
 0x5a4   : > { %v1313_v57 = vadd.f32 %v1294_v49, %v1265_v38 }
 0x5a5   : > { %1329 = vst.msk [vmem:[#allocation6 + $0x58] sm:$0xff] %vm1317_vm4, %v1312_v14 }
 0x5a6   : > { %1330 = vst.msk [vmem:[#allocation6 + $0x60] sm:$0xff] %vm1317_vm4, %v1313_v57 }
 0x5a9   : > { %v1505_v11 = vpop.f32.mrf.mxu2 }
 0x5aa   : > { %v1527_v62 = vadd.f32 %v1505_v11, %v1442_v21  ;;  %v1296_v63 = vpop.xlane.xlu2 %1295 }
 0x5ab   : > { %v1314_v4 = vadd.f32 %v1296_v63, %v1266_v13  ;;  %v1298_v53 = vpop.xlane.xlu1 %1297 }
 0x5ac   : > { %1543 = vst.msk [vmem:[#allocation7 + $0x60] sm:$0xff] %vm923_vm3, %v1527_v62  ;;  %v1315_v1 = vadd.f32 %v1298_v53, %v1267_v17 }
 0x5ad   : > { %1331 = vst.msk [vmem:[#allocation6 + $0x68] sm:$0xff] %vm1317_vm4, %v1314_v4 }
 0x5ae   : > { %1332 = vst.msk [vmem:[#allocation6 + $0x70] sm:$0xff] %vm1317_vm4, %v1315_v1 }
 0x5b1   : > { %v1507_v6 = vpop.f32.mrf.mxu2 }
 0x5b2   : > { %v1418_v7 = vpop.permute.xlu2 %1417 }
 0x5b3   : > { %v1443_v8 = vmul.f32 %v1418_v7, %v1347_v24 }
 0x5b5   : > { %v1528_v34 = vadd.f32 %v1507_v6, %v1443_v8 }
 0x5b7   : > { %1544 = vst.msk [vmem:[#allocation7 + $0x68] sm:$0xff] %vm923_vm3, %v1528_v34 }
 0x5b9   : > { %v1510_v0 = vpop.f32.mrf.mxu2 }
 0x5c1   : > { %v1512_v2 = vpop.f32.mrf.mxu2 }
 0x5c2   : > { %v1530_v44 = vadd.f32 %v1512_v2, %v1445_v22 }
 0x5c3   : > { %v1423_v51 = vpop.permute.xlu1 %1422 }
 0x5c4   : > { %1546 = vst.msk [vmem:[#allocation7 + $0x78] sm:$0xff] %vm923_vm3, %v1530_v44  ;;  %v1444_v12 = vmul.f32 %v1423_v51, %v1348_v35  ;;  %1566 = sbr.rel (%p2091_p13) target bundleno = 1820 (0x71c), region = 142 }
 0x5c6   : > { %v1529_v20 = vadd.f32 %v1510_v0, %v1444_v12 }
 0x5c8   : > { %1545 = vst.msk [vmem:[#allocation7 + $0x70] sm:$0xff] %vm923_vm3, %v1529_v20 }
 0x5c9   : > { %v1581_v18 = vld [vmem:[#allocation6 + $0x70] sm:$0xff]  ;;  %v1579_v28 = vld [vmem:[#allocation6 + $0x60] sm:$0xff]  ;;  %v2619_v30 = vmov 0   ;;  %v1582_v50 = vld [vmem:[#allocation6 + $0x78] sm:$0xff] }
 0x5ca   : > { %2409 = vset.pattern.permute.xlu1 %v2619_v30  ;;  %2408 = vset.pattern.permute.xlu0 %v2619_v30  ;;  %2414 = vrcp.f32 %v1581_v18  ;;  %v1577_v19 = vld [vmem:[#allocation6 + $0x50] sm:$0xff]  ;;  %v1580_v26 = vld [vmem:[#allocation6 + $0x68] sm:$0xff]  ;;  %v1578_v16 = vld [vmem:[#allocation6 + $0x58] sm:$0xff] }
 0x5cb   : > { %2416 = vrcp.f32 %v1579_v28  ;;  %2410 = vset.pattern.permute.xlu2 %v2619_v30  ;;  %v1575_v45 = vld [vmem:[#allocation6 + $0x40] sm:$0xff]  ;;  %v1576_v60 = vld [vmem:[#allocation6 + $0x48] sm:$0xff]  ;;  %v1573_v37 = vld [vmem:[#allocation6 + $0x30] sm:$0xff] }
 0x5cc   : > { %2418 = vrcp.f32 %v1577_v19  ;;  %v1574_v29 = vld [vmem:[#allocation6 + $0x38] sm:$0xff]  ;;  %v1571_v61 = vld [vmem:[#allocation6 + $0x20] sm:$0xff]  ;;  %v1572_v59 = vld [vmem:[#allocation6 + $0x28] sm:$0xff] }
 0x5cd   : > { %2420 = vrcp.f32 %v1582_v50  ;;  %v1569_v31 = vld [vmem:[#allocation6 + $0x10] sm:$0xff]  ;;  %v1570_v39 = vld [vmem:[#allocation6 + $0x18] sm:$0xff]  ;;  %v1567_v40 = vld [vmem:[#allocation6] sm:$0xff] }
 0x5ce   : > { %2422 = vrcp.f32 %v1580_v26  ;;  %v1568_v58 = vld [vmem:[#allocation6 + $0x8] sm:$0xff]  ;;  %v1614_v57 = vld [vmem:[#allocation7 + $0x78] sm:$0xff]  ;;  %v1611_v11 = vld [vmem:[#allocation7 + $0x60] sm:$0xff] }
 0x5cf   : > { %2424 = vrcp.f32 %v1578_v16  ;;  %v1613_v49 = vld [vmem:[#allocation7 + $0x70] sm:$0xff]  ;;  %v1612_v13 = vld [vmem:[#allocation7 + $0x68] sm:$0xff]  ;;  %v1610_v6 = vld [vmem:[#allocation7 + $0x58] sm:$0xff] }
 0x5d0   : > { %v2415_v43 = vpop.eup %2414  ;;  %2426 = vrcp.f32 %v1575_v45  ;;  %v1609_v24 = vld [vmem:[#allocation7 + $0x50] sm:$0xff]  ;;  %v1608_v22 = vld [vmem:[#allocation7 + $0x48] sm:$0xff]  ;;  %v1607_v35 = vld [vmem:[#allocation7 + $0x40] sm:$0xff] }
 0x5d1   : > { %v2417_v15 = vpop.eup %2416  ;;  %1687 = vperm.xlu0 %2408, %v2415_v43   ;;  %2428 = vrcp.f32 %v1576_v60  ;;  %v1606_v18 = vld [vmem:[#allocation7 + $0x38] sm:$0xff]  ;;  %v1605_v30 = vld [vmem:[#allocation7 + $0x30] sm:$0xff]  ;;  %v1604_v45 = vld [vmem:[#allocation7 + $0x28] sm:$0xff] }
 0x5d2   : > { %1677 = vperm.xlu1 %2409, %v2417_v15   ;;  %v2419_v36 = vpop.eup %2418  ;;  %2430 = vrcp.f32 %v1573_v37  ;;  %v1726_v37 = vld [vmem:[%s3422_s5 + $0x10] sm:$0xff] }
 0x5d3   : > { %1667 = vperm.xlu2 %2410, %v2419_v36   ;;  %v2421_v25 = vpop.eup %2420  ;;  %2432 = vrcp.f32 %v1574_v29  ;;  %v1603_v36 = vld [vmem:[#allocation7 + $0x20] sm:$0xff] }
 0x5d4   : > { %v2423_v32 = vpop.eup %2422  ;;  %2434 = vrcp.f32 %v1571_v61  ;;  %v1725_v61 = vld [vmem:[%s3422_s5 + $0x8] sm:$0xff] }
 0x5d5   : > { %v2425_v56 = vpop.eup %2424  ;;  %2436 = vrcp.f32 %v1572_v59 }
 0x5d6   : > { %v2427_v52 = vpop.eup %2426  ;;  %2438 = vrcp.f32 %v1569_v31 }
 0x5d7   : > { %v2429_v54 = vpop.eup %2428  ;;  %2440 = vrcp.f32 %v1570_v39 }
 0x5d8   : > { %v2431_v55 = vpop.eup %2430  ;;  %2442 = vrcp.f32 %v1567_v40 }
 0x5d9   : > { %1692 = vperm.xlu0 %2408, %v2421_v25   ;;  %v2433_v41 = vpop.eup %2432  ;;  %2444 = vrcp.f32 %v1568_v58 }
 0x5da   : > { %1682 = vperm.xlu1 %2409, %v2423_v32   ;;  %v2435_v47 = vpop.eup %2434  ;;  %v1724_v32 = vld [vmem:[%s3422_s5] sm:$0xff] }
 0x5db   : > { %1672 = vperm.xlu2 %2410, %v2425_v56   ;;  %v2437_v42 = vpop.eup %2436 }
 0x5dc   : > { %v2439_v3 = vpop.eup %2438 }
 0x5dd   : > { %v2441_v10 = vpop.eup %2440 }
 0x5de   : > { %v2443_v33 = vpop.eup %2442 }
 0x5df   : > { %v2445_v9 = vpop.eup %2444 }
 0x5e1   : > { %1657 = vperm.xlu0 %2408, %v2427_v52   ;;  %v2620_v52 = vmov 3  }
 0x5e2   : > { %1662 = vperm.xlu1 %2409, %v2429_v54  }
 0x5e3   : > { %1647 = vperm.xlu2 %2410, %v2431_v55   ;;  %v1602_v55 = vld [vmem:[#allocation7 + $0x18] sm:$0xff] }
 0x5e9   : > { %1652 = vperm.xlu0 %2408, %v2433_v41   ;;  %v1601_v41 = vld [vmem:[#allocation7 + $0x10] sm:$0xff] }
 0x5ea   : > { %1637 = vperm.xlu1 %2409, %v2435_v47  }
 0x5eb   : > { %1642 = vperm.xlu2 %2410, %v2437_v42   ;;  %v1727_v42 = vld [vmem:[%s3422_s5 + $0x18] sm:$0xff] }
 0x5f1   : > { %1627 = vperm.xlu0 %2408, %v2439_v3   ;;  %v1600_v3 = vld [vmem:[#allocation7 + $0x8] sm:$0xff] }
 0x5f2   : > { %1632 = vperm.xlu1 %2409, %v2441_v10  }
 0x5f3   : > { %1617 = vperm.xlu2 %2410, %v2443_v33   ;;  %v1599_v33 = vld [vmem:[#allocation7] sm:$0xff] }
 0x5f9   : > { %1622 = vperm.xlu0 %2408, %v2445_v9  }
 0x5fa   : > { %2411 = vset.pattern.permute.xlu1 %v2620_v52 }
 0x5fb   : > { %1730 = vperm.xlu1 %2411, %v1724_v32   ;;  %2412 = vset.pattern.permute.xlu2 %v2620_v52 }
 0x5fc   : > { %1735 = vperm.xlu2 %2412, %v1725_v61  }
 0x601   : > { %2413 = vset.pattern.permute.xlu0 %v2620_v52 }
 0x602   : > { %1740 = vperm.xlu0 %2413, %v1726_v37  }
 0x603   : > { %1745 = vperm.xlu1 %2411, %v1727_v42  }
 0x62d   : > { %v1668_v21 = vpop.permute.xlu2 %1667 }
 0x62e   : > { %v1705_v8 = vmul.f32 %v1668_v21, %v1609_v24  ;;  %v2168_v21 = vld [vmem:[%s2820_s6] sm:$0xff]  }
 0x635   : > { %v1673_v7 = vpop.permute.xlu2 %1672 }
 0x636   : > { %v1706_v34 = vmul.f32 %v1673_v7, %v1610_v6 }
 0x638   : > { %v1716_v23 = vpack.c.bf16 %v1706_v34, %v1705_v8 }
 0x63a   : > { %v1780_v12 = vsel %vm923_vm3, %v1716_v23, 0 }
 0x63d   : > { %v1648_v19 = vpop.permute.xlu2 %1647 }
 0x63e   : > { %v1701_v43 = vmul.f32 %v1648_v19, %v1605_v30 }
 0x643   : > { %v1688_v38 = vpop.permute.xlu0 %1687 }
 0x644   : > { %v1678_v14 = vpop.permute.xlu1 %1677  ;;  %v1709_v46 = vmul.f32 %v1688_v38, %v1613_v49 }
 0x645   : > { %v1707_v17 = vmul.f32 %v1678_v14, %v1611_v11  ;;  %v1643_v56 = vpop.permute.xlu2 %1642  ;;  %v2179_v11 = vld [vmem:[%s2820_s6 + $0x8] sm:$0xff]  }
 0x646   : > { %v1700_v29 = vmul.f32 %v1643_v56, %v1604_v45 }
 0x64b   : > { %v1693_v5 = vpop.permute.xlu0 %1692 }
 0x64c   : > { %v1710_v48 = vmul.f32 %v1693_v5, %v1614_v57  ;;  %v1683_v62 = vpop.permute.xlu1 %1682 }
 0x64d   : > { %v1708_v4 = vmul.f32 %v1683_v62, %v1612_v13  ;;  %v1618_v9 = vpop.permute.xlu2 %1617 }
 0x64e   : > { %v1718_v63 = vpack.c.bf16 %v1710_v48, %v1709_v46  ;;  %v1695_v49 = vmul.f32 %v1618_v9, %v1599_v33  ;;  %v2127_v46 = vld [vmem:[#allocation10 + $0x30] sm:$0xff]  ;;  %v2128_v48 = vld [vmem:[#allocation10 + $0x38] sm:$0xff] }
 0x64f   : > { %v1717_v1 = vpack.c.bf16 %v1708_v4, %v1707_v17  ;;  %v2173_v17 = vunpack.c.l.bf16 %v2179_v11 }
 0x650   : > { %v1786_v53 = vsel %vm923_vm3, %v1718_v63, 0  ;;  %v2169_v63 = vunpack.c.l.bf16 %v2168_v21 }
 0x651   : > { %1788 = vmatpush.bf16.xpose.msra.mxu0 %v1786_v53  ;;  %2190 = vmatpush.bf16.xpose.msra.mxu1 %v1786_v53  ;;  %v1783_v0 = vsel %vm923_vm3, %v1717_v1, 0 }
 0x653   : > { %v1658_v27 = vpop.permute.xlu0 %1657 }
 0x654   : > { %v1663_v2 = vpop.permute.xlu1 %1662  ;;  %v1703_v51 = vmul.f32 %v1658_v27, %v1607_v35  ;;  %v2170_v27 = vunpack.c.h.bf16 %v2168_v21 }
 0x655   : > { %v1704_v44 = vmul.f32 %v1663_v2, %v1608_v22 }
 0x656   : > { %v1736_v8 = vpop.permute.xlu2 %1735 }
 0x657   : > { %v1715_v20 = vpack.c.bf16 %v1704_v44, %v1703_v51 }
 0x659   : > { %1789 = vmatpush.bf16.xpose.msra.mxu0 %v1783_v0  ;;  %2191 = vmatpush.bf16.xpose.msra.mxu1 %v1783_v0  ;;  %v1777_v26 = vsel %vm923_vm3, %v1715_v20, 0  ;;  %v2174_v0 = vunpack.c.h.bf16 %v2179_v11 }
 0x65b   : > { %v1653_v28 = vpop.permute.xlu0 %1652 }
 0x65c   : > { %v1702_v50 = vmul.f32 %v1653_v28, %v1606_v18  ;;  %v1638_v15 = vpop.permute.xlu1 %1637 }
 0x65d   : > { %v1699_v25 = vmul.f32 %v1638_v15, %v1603_v36 }
 0x65e   : > { %v1714_v16 = vpack.c.bf16 %v1702_v50, %v1701_v43 }
 0x65f   : > { %v1713_v59 = vpack.c.bf16 %v1700_v29, %v1699_v25 }
 0x660   : > { %v1774_v60 = vsel %vm923_vm3, %v1714_v16, 0 }
 0x661   : > { %1790 = vmatpush.bf16.xpose.msra.mxu0 %v1780_v12  ;;  %2192 = vmatpush.bf16.xpose.msra.mxu1 %v1780_v12  ;;  %v1771_v40 = vsel %vm923_vm3, %v1713_v59, 0 }
 0x663   : > { %v1628_v54 = vpop.permute.xlu0 %1627 }
 0x664   : > { %v1633_v31 = vpop.permute.xlu1 %1632  ;;  %v1697_v47 = vmul.f32 %v1628_v54, %v1601_v41 }
 0x665   : > { %v1698_v39 = vmul.f32 %v1633_v31, %v1602_v55 }
 0x667   : > { %v1712_v58 = vpack.c.bf16 %v1698_v39, %v1697_v47 }
 0x669   : > { %1791 = vmatpush.bf16.xpose.msra.mxu0 %v1777_v26  ;;  %2193 = vmatpush.bf16.xpose.msra.mxu1 %v1777_v26  ;;  %v1768_v14 = vsel %vm923_vm3, %v1712_v58, 0 }
 0x66b   : > { %v1623_v10 = vpop.permute.xlu0 %1622 }
 0x66c   : > { %v1696_v38 = vmul.f32 %v1623_v10, %v1600_v3 }
 0x66d   : > { %v1731_v13 = vpop.permute.xlu1 %1730 }
 0x66e   : > { %v1711_v57 = vpack.c.bf16 %v1696_v38, %v1695_v49 }
 0x670   : > { %v1765_v5 = vsel %vm923_vm3, %v1711_v57, 0 }
 0x671   : > { %1792 = vmatpush.bf16.xpose.msra.mxu0 %v1774_v60  ;;  %2194 = vmatpush.bf16.xpose.msra.mxu1 %v1774_v60 }
 0x674   : > { %v1741_v62 = vpop.permute.xlu0 %1740 }
 0x675   : > { %v1746_v34 = vpop.permute.xlu1 %1745 }
 0x679   : > { %1793 = vmatpush.bf16.xpose.msra.mxu0 %v1771_v40  ;;  %2195 = vmatpush.bf16.xpose.msra.mxu1 %v1771_v40 }
 0x681   : > { %1794 = vmatpush.bf16.xpose.msra.mxu0 %v1768_v14  ;;  %2196 = vmatpush.bf16.xpose.msra.mxu1 %v1768_v14 }
 0x689   : > { %1795 = vmatpush.bf16.xpose.msra.mxu0 %v1765_v5  ;;  %2197 = vmatpush.bf16.xpose.msra.mxu1 %v1765_v5 }
 0x690   : > { %2100 = vmatmul.msk.bf16.vlgmr.msra.gmra.mxu0 %vm923_vm3, %v2127_v46  ;;  %2101 = vmatmul.msk.bf16.vlgmr.msra.gmra.mxu1 %vm923_vm3, %v2128_v48 }
 0x70d   : > { %v1797_v4 = vpop.f32.mrf.mxu0  ;;  %v1802_v53 = vpop.f32.mrf.mxu1 }
 0x70e   : > { %v1798_v1 = vadd.f32 %v1797_v4, %v1731_v13  ;;  %v1803_v24 = vadd.f32 %v1802_v53, %v1741_v62 }
 0x710   : > { %v1815_v6 = vadd.f32 %v2169_v63, %v1798_v1  ;;  %v1817_v7 = vadd.f32 %v2173_v17, %v1803_v24 }
 0x712   : > { %1819 = vst [vmem:[%s2839_s9] sm:$0xff] %v1815_v6 }
 0x713   : > { %1821 = vst [vmem:[%s2839_s9 + $0x10] sm:$0xff] %v1817_v7 }
 0x715   : > { %v1799_v23 = vpop.f32.mrf.mxu0  ;;  %v1804_v22 = vpop.f32.mrf.mxu1 }
 0x716   : > { %v1805_v2 = vadd.f32 %v1804_v22, %v1746_v34  ;;  %v1800_v35 = vadd.f32 %v1799_v23, %v1736_v8 }
 0x718   : > { %v1818_v44 = vadd.f32 %v2174_v0, %v1805_v2  ;;  %v1816_v51 = vadd.f32 %v2170_v27, %v1800_v35 }
 0x71a   : > { %1822 = vst [vmem:[%s2839_s9 + $0x18] sm:$0xff] %v1818_v44 }
 0x71b   : > { %1820 = vst [vmem:[%s2839_s9 + $0x8] sm:$0xff] %v1816_v51 }
 0x71c PF: > { %s3423_s6 = sld [smem:[#allocation17_spill]]  ;;  %s2103_s4 = sshll.u32 %s2590_s28, 3 }
 0x71d   : > { %s1837_s22 = sshll.u32 %s2839_s9, 4  ;;  %s3425_s13 = sld [smem:[#allocation26_spill]]  ;;  %s1838_s22 = int_to_ptr.vmem [resolvable:$true] %s1837_s22 }
 0x71e   : > { %s1824_s18 = scalar_lea.sflag [#allocation12], %s2816_s19 }
 0x722   : > { %s1834_s10 = sadd.s32 %s3423_s6, %s2103_s4 }
 0x723   : > { %s2104_s14 = sshll.u32 %s1834_s10, 3  ;;  %s2496_s9 = scalar_lea.hbm %s3425_s13, 128 }
 0x724   : > { %s1836_s5 = scalar_lea.hbm %s3425_s13, %s2104_s14 }
 0x725   : > { %s1839_s20 = sshll.u32 %s1836_s5, 4  ;;  %s1840_s20 = int_to_ptr.hbm [resolvable:$true] %s1839_s20 }
 0x726   : > { %s2490_s16 = sshra.s32 %s1840_s20, 4  ;;  %s2491_s16 = int_to_ptr.hbm [resolvable:$true] %s2490_s16 }
 0x727   : > { %s2492_s27 = scalar_lea.hbm %s2491_s16, 32  ;;  %p2497_p5 = scmp.lt.s32.totalorder %s2491_s16, %s3425_s13 }
 0x728   : > { %p2493_p0 = scmp.ne.s32.totalorder %s2491_s16, %s2492_s27  ;;  %p2498_p1 = scmp.lt.s32.totalorder %s2496_s9, %s2492_s27 }
 0x72a   : > { %p2494_p2 = pnand %p2493_p0, %p2761_p11  ;;  %p2499_p7 = por %p2498_p1, %p2497_p5 }
 0x72c   : > { %p2495_p3 = pneg %p2494_p2 }
 0x72e   : > { %p2500_p8 = pnand %p2499_p7, %p2495_p3 }
 0x730   : > { %2503 = shalt.err (!%p2500_p8)
}
 0x731   : > { %s2621_s19 = smov 128   ;;  %s2622_s4 = smov 256  }
 0x732   : > { %s2623_s10 = smov 8  }
 0x733   : > { %2202 = dma.vmem_to_hbm [thread:$0]  (%p2761_p11), %s1838_s22, 512, %s1840_s20, %s1824_s18, %s2621_s19, %s2622_s4, %s2623_s10  }
 0x734 PF: > { %s3426_s14 = sld [smem:[#allocation16_spill]]  ;;  %p2214_p9 = scmp.ge.s32.totalorder %s2606_s8, 2 }
 0x736   : > { %p2209_p4 = pnand %p2214_p9, %p2765_p12 }
 0x738   : > { %p2210_p6 = pneg %p2209_p4 }
 0x73a   : > { %s1854_s15 = sand.u32 1, %s3426_s14  }
 0x73b   : > { %s1855_s26 = scalar_lea.sflag [#allocation12], %s1854_s15 }
 0x73c   : > { %2557 = dma.done.wait (%p2210_p6), %s1855_s26, 512  }
 0x73d   : > { %2559 = vsyncadd (%p2210_p6), %s1855_s26, 4294966784  ;;  %s20_s8 = sadd.s32 1, %s2606_s8   ;;  %s3427_s5 = sld [smem:[#allocation23_spill]] }
 0x73e   : > { %p17_p10 = scmp.ge.s32.totalorder %s20_s8, 10   ;;  %s3428_s17 = sld [smem:[#allocation22_spill]] }
 0x73f   : > { %s3429_s20 = sld [smem:[#allocation18_spill]]  ;;  %s3432_s21 = smov %s2574_s24 }
 0x740   : > { %s3430_s18 = sld [smem:[#allocation19_spill]]  ;;  %s3433_s22 = smov %s2570_s23 }
 0x741   : > { %s3431_s16 = sld [smem:[#allocation20_spill]]  ;;  %s3435_s24 = smov %s2578_s25 }
 0x742   : > { %s3437_s26 = smov %s2594_s29  ;;  %s3438_s27 = smov %s2598_s30 }
 0x743   : > { %s3434_s23 = smov %s3427_s5  ;;  %s3439_s28 = smov %s2602_s7 }
 0x744   : > { %s3436_s25 = smov %s3428_s17  ;;  %19 = sbr.rel (!%p17_p10) target bundleno = 12 (0xc), region = 204 }
 0x745   : > { %s3440_s29 = smov %s3429_s20 }
 0x746   : > { %s3441_s30 = smov %s3430_s18 }
 0x747   : > { %s3442_s7 = smov %s3431_s16 }
 0x749   :  { %1861 = vsyncpa [#allocation11], 1 }
 0x74a   :  { %1863 = vsyncpa [#allocation11 + $0x1], 1 }
 0x74b   :  { %1864 = vsyncpa [#allocation12], 1 }
 0x74c   :  { %1866 = vsyncpa [#allocation12 + $0x1], 1 }

</bundles_post_ra>
